<compile_context>
chip_gen: v5e
topology: v5e:2x2
jax: 0.10.0
libtpu: 0.0.40
codegen_flags: <defaults>
</compile_context>

<pallas_src>
import functools
import math

import jax
import jax.numpy as jnp
from jax.experimental import pallas as pl
from jax.experimental.pallas import tpu as pltpu

VMEM_SPEC = pl.BlockSpec(memory_space=pltpu.MemorySpace.VMEM)

CFG = dict(
    vocab=100,
    type_vocab=2,
    max_pos=16,
    hidden=32,
    heads=2,
    layers=2,
    inter=64,
    ln_eps=1e-12,
)


# ----------------------------- fused Pallas kernel ---------------------------

def _bert_fused_kernel(
    ids_ref, amask_ref, pte_ref,
    wemb_ref, eg_ref, eb_ref,
    wqkv_ref, bqkv_ref, wo_ref, bo_ref, g1_ref, b1_ref,
    wi_ref, bi_ref, wf_ref, bf_ref, g2_ref, b2_ref,
    pw_ref, pb_ref,
    out_ref,
    *, S, H, nh, L, vocab, eps,
):
    dh = H // nh
    scale = 1.0 / math.sqrt(dh)

    def layernorm(x, g, b):
        # two-pass mean/variance (avoids E[x^2]-E[x]^2 cancellation)
        mu = jnp.sum(x, axis=-1, keepdims=True) * (1.0 / H)
        xc = x - mu
        var = jnp.sum(xc * xc, axis=-1, keepdims=True) * (1.0 / H)
        return xc * jax.lax.rsqrt(var + eps) * g + b

    def gelu(x):
        # tanh-approx GELU (EUP tanh slot); delta vs exact erf is negligible at these scales
        c = 0.7978845608028654  # sqrt(2/pi)
        return 0.5 * x * (1.0 + jnp.tanh(c * (x + 0.044715 * x * x * x)))

    # ---- embeddings for this grid step's batch row: word lookup as one-hot matmul (MXU) ----
    ids = ids_ref[0]                                                      # [S, 1] int32
    col = jax.lax.broadcasted_iota(jnp.int32, (S, vocab), 1)
    onehot = (col == ids).astype(jnp.float32)                            # [S, vocab]
    we = jnp.dot(onehot, wemb_ref[...], preferred_element_type=jnp.float32)   # [S, H]
    # pos + token_type(=0) embeddings precomputed in the wrapper -> plain broadcast add
    h = layernorm(we + pte_ref[...], eg_ref[...], eb_ref[...])           # [S, H]

    amask = amask_ref[0]                                                  # [nh, 1, S]

    for l in range(L):  # TODO(synk): fori_loop / grid axis once L grows beyond the toy 2
        # Head-batched QKV projection: q/k/v come out already head-major [nh, S, dh];
        # no sub-128-lane slices, no transposes, only leading-dim slicing below.
        h_g = jnp.broadcast_to(h, (3 * nh, S, H))                        # [3*nh, S, H]
        qkv = jnp.einsum('gsh,ghd->gsd', h_g, wqkv_ref[l],
                         preferred_element_type=jnp.float32) + bqkv_ref[l]   # [3*nh, S, dh]
        q_g = qkv[0:nh]                                                   # [nh, S, dh]
        k_g = qkv[nh:2 * nh]
        v_g = qkv[2 * nh:3 * nh]

        # one batched QK^T einsum + one batched PV einsum (instead of 2*B*nh tiny dots)
        s = jnp.einsum('gqd,gkd->gqk', q_g, k_g,
                       preferred_element_type=jnp.float32) * scale + amask   # [nh, S, S]
        s = s - jnp.max(s, axis=-1, keepdims=True)
        p = jnp.exp(s)
        p = p * pl.reciprocal(jnp.sum(p, axis=-1, keepdims=True), approx=True)
        ctx = jnp.einsum('gqk,gkd->gqd', p, v_g,
                         preferred_element_type=jnp.float32)              # [nh, S, dh]

        # output projection: one batched per-head matmul, summed over heads (no concatenate)
        proj = jnp.einsum('gsd,gdh->gsh', ctx, wo_ref[l],
                          preferred_element_type=jnp.float32)             # [nh, S, H]
        attn = proj[0]
        for n in range(1, nh):
            attn = attn + proj[n]
        attn = attn + bo_ref[l]                                           # [S, H]
        h = layernorm(attn + h, g1_ref[l], b1_ref[l])

        inter = jnp.dot(h, wi_ref[l], preferred_element_type=jnp.float32) + bi_ref[l]
        inter = gelu(inter)
        ffn = jnp.dot(inter, wf_ref[l], preferred_element_type=jnp.float32) + bf_ref[l]
        h = layernorm(ffn + h, g2_ref[l], b2_ref[l])

    # ---- BertPooler on the [CLS] row of this batch element ----
    cls = h[0:1, :]                                                       # [1, H]
    out_ref[0] = jnp.tanh(
        jnp.dot(cls, pw_ref[...], preferred_element_type=jnp.float32) + pb_ref[...])


# ----------------------------- parameter init --------------------------------

def init_params(key, cfg):
    H, I = cfg["hidden"], cfg["inter"]
    std = 0.02

    def nrm(k, shape):
        return std * jax.random.normal(k, shape, dtype=jnp.float32)

    keys = iter(jax.random.split(key, 64))
    params = dict(
        word_emb=nrm(next(keys), (cfg["vocab"], H)),
        pos_emb=nrm(next(keys), (cfg["max_pos"], H)),
        type_emb=nrm(next(keys), (cfg["type_vocab"], H)),
        emb_ln_g=jnp.ones((H,), jnp.float32),
        emb_ln_b=jnp.zeros((H,), jnp.float32),
        pool_w=nrm(next(keys), (H, H)),
        pool_b=jnp.zeros((H,), jnp.float32),
        layers=[],
    )
    for _ in range(cfg["layers"]):
        lp = dict(
            wq=nrm(next(keys), (H, H)), bq=jnp.zeros((H,), jnp.float32),
            wk=nrm(next(keys), (H, H)), bk=jnp.zeros((H,), jnp.float32),
            wv=nrm(next(keys), (H, H)), bv=jnp.zeros((H,), jnp.float32),
            wo=nrm(next(keys), (H, H)), bo=jnp.zeros((H,), jnp.float32),
            ln1_g=jnp.ones((H,), jnp.float32), ln1_b=jnp.zeros((H,), jnp.float32),
            wi=nrm(next(keys), (H, I)), bi=jnp.zeros((I,), jnp.float32),
            wf=nrm(next(keys), (I, H)), bf=jnp.zeros((H,), jnp.float32),
            ln2_g=jnp.ones((H,), jnp.float32), ln2_b=jnp.zeros((H,), jnp.float32),
        )
        params["layers"].append(lp)
    return params


def _pack_params(params, cfg):
    """Stack per-layer weights; pre-split Q/K/V/out-proj into head-major blocks."""
    H, I, nh = cfg["hidden"], cfg["inter"], cfg["heads"]
    dh = H // nh

    def heads_cols(w):   # [H, H] -> [nh, H, dh] (per-head output columns)
        return jnp.stack([w[:, n * dh:(n + 1) * dh] for n in range(nh)], axis=0)

    def heads_bias(b):   # [H] -> [nh, 1, dh]
        return jnp.stack([b[n * dh:(n + 1) * dh].reshape(1, dh) for n in range(nh)], axis=0)

    def stack(fn):
        return jnp.stack([fn(lp) for lp in params["layers"]])

    return dict(
        wemb=params["word_emb"],
        eg=params["emb_ln_g"].reshape(1, H), eb=params["emb_ln_b"].reshape(1, H),
        # [L, 3*nh, H, dh]: order = q heads, k heads, v heads
        wqkv=stack(lambda lp: jnp.concatenate(
            [heads_cols(lp["wq"]), heads_cols(lp["wk"]), heads_cols(lp["wv"])], axis=0)),
        bqkv=stack(lambda lp: jnp.concatenate(
            [heads_bias(lp["bq"]), heads_bias(lp["bk"]), heads_bias(lp["bv"])], axis=0)),
        wo=stack(lambda lp: lp["wo"].reshape(nh, dh, H)),                 # [L, nh, dh, H]
        bo=stack(lambda lp: lp["bo"].reshape(1, H)),
        g1=stack(lambda lp: lp["ln1_g"].reshape(1, H)),
        b1=stack(lambda lp: lp["ln1_b"].reshape(1, H)),
        wi=stack(lambda lp: lp["wi"]),
        bi=stack(lambda lp: lp["bi"].reshape(1, I)),
        wf=stack(lambda lp: lp["wf"]),
        bf=stack(lambda lp: lp["bf"].reshape(1, H)),
        g2=stack(lambda lp: lp["ln2_g"].reshape(1, H)),
        b2=stack(lambda lp: lp["ln2_b"].reshape(1, H)),
        pw=params["pool_w"], pb=params["pool_b"].reshape(1, H),
    )


# ------------------------------- forward pass ---------------------------------

def bert_pooled_output(params, input_ids, attention_mask, cfg=CFG):
    B, S = input_ids.shape
    H, nh, L = cfg["hidden"], cfg["heads"], cfg["layers"]

    p = _pack_params(params, cfg)
    ids = input_ids.reshape(B, S, 1).astype(jnp.int32)
    # additive attention mask, pre-broadcast to head-major [B, nh, 1, S] in the wrapper
    amask = jnp.broadcast_to(
        ((1.0 - attention_mask.astype(jnp.float32)) * jnp.float32(-1e9))[:, None, None, :],
        (B, nh, 1, S))
    # position + token_type(=0) embeddings precomputed once as [S, H]
    pte = params["pos_emb"][:S] + params["type_emb"][0][None, :]

    kernel = functools.partial(
        _bert_fused_kernel, S=S, H=H, nh=nh, L=L, vocab=cfg["vocab"], eps=cfg["ln_eps"])

    out = pl.pallas_call(
        kernel,
        grid=(B,),
        out_shape=jax.ShapeDtypeStruct((B, 1, H), jnp.float32),
        in_specs=[
            pl.BlockSpec((1, S, 1), lambda b: (b, 0, 0)),          # ids   (per-batch block)
            pl.BlockSpec((1, nh, 1, S), lambda b: (b, 0, 0, 0)),   # amask (per-batch block)
        ] + [VMEM_SPEC] * 18,                                      # weights: whole-array VMEM
        out_specs=pl.BlockSpec((1, 1, H), lambda b: (b, 0, 0)),
        compiler_params=pltpu.CompilerParams(dimension_semantics=("parallel",)),
    )(ids, amask, pte,
      p["wemb"], p["eg"], p["eb"],
      p["wqkv"], p["bqkv"], p["wo"], p["bo"], p["g1"], p["b1"],
      p["wi"], p["bi"], p["wf"], p["bf"], p["g2"], p["b2"],
      p["pw"], p["pb"])
    return out.reshape(B, H)


# ------------------------------ pure-JAX reference ----------------------------

def bert_pooled_output_ref(params, input_ids, attention_mask, cfg=CFG):
    B, S = input_ids.shape
    H, nh = cfg["hidden"], cfg["heads"]
    dh = H // nh
    scale = 1.0 / math.sqrt(dh)

    def ln(x, g, b):
        mu = jnp.mean(x, axis=-1, keepdims=True)
        var = jnp.mean((x - mu) ** 2, axis=-1, keepdims=True)
        return (x - mu) * jax.lax.rsqrt(var + cfg["ln_eps"]) * g + b

    we = params["word_emb"][input_ids]
    pe = params["pos_emb"][:S][None, :, :]
    te = params["type_emb"][jnp.zeros((B, S), jnp.int32)]
    h = ln(we + pe + te, params["emb_ln_g"], params["emb_ln_b"])          # [B,S,H]
    ext = (1.0 - attention_mask.astype(jnp.float32)) * -1e9               # [B,S]

    for lp in params["layers"]:
        q = h @ lp["wq"] + lp["bq"]
        k = h @ lp["wk"] + lp["bk"]
        v = h @ lp["wv"] + lp["bv"]

        def split(x):
            return x.reshape(B, S, nh, dh).transpose(0, 2, 1, 3)

        qh, kh, vh = split(q), split(k), split(v)
        s = jnp.einsum("bhqd,bhkd->bhqk", qh, kh) * scale + ext[:, None, None, :]
        p = jax.nn.softmax(s, axis=-1)
        ctx = jnp.einsum("bhqk,bhkd->bhqd", p, vh).transpose(0, 2, 1, 3).reshape(B, S, H)
        attn = ctx @ lp["wo"] + lp["bo"]
        h = ln(attn + h, lp["ln1_g"], lp["ln1_b"])
        inter = h @ lp["wi"] + lp["bi"]
        inter = 0.5 * inter * (1.0 + jax.lax.erf(inter * 0.7071067811865475))  # exact GELU
        ffn = inter @ lp["wf"] + lp["bf"]
        h = ln(ffn + h, lp["ln2_g"], lp["ln2_b"])

    cls = h[:, 0, :]
    return jnp.tanh(cls @ params["pool_w"] + params["pool_b"])


# ----------------------------------- main --------------------------------------

if __name__ == "__main__":
    key = jax.random.PRNGKey(0)
    k_param, k_ids = jax.random.split(key)

    B, S = 2, 8
    params = init_params(k_param, CFG)
    input_ids = jax.random.randint(k_ids, (B, S), 0, CFG["vocab"], dtype=jnp.int32)
    attention_mask = jnp.array(
        [[1, 1, 1, 1, 1, 1, 1, 1],
         [1, 1, 1, 1, 1, 1, 0, 0]], dtype=jnp.int32)

    pooled = jax.jit(bert_pooled_output)(params, input_ids, attention_mask)
    pooled = jax.block_until_ready(pooled)

    assert pooled.shape == (B, CFG["hidden"])
    assert bool(jnp.all(jnp.isfinite(pooled)))

    ref = bert_pooled_output_ref(params, input_ids, attention_mask)
    assert bool(jnp.allclose(pooled, ref, atol=5e-2, rtol=5e-2)), (
        "max abs diff vs reference: %f" % float(jnp.max(jnp.abs(pooled - ref))))

    print("KERNEL_OK")
</pallas_src>

<mosaic_0001>
module attributes {stable_mosaic.version = 11 : i64} {
  func.func @_bert_fused_kernel(%arg0: i32, %arg1: memref<1x8x1xi32, #tpu.memory_space<vmem>>, %arg2: memref<1x2x1x8xf32, #tpu.memory_space<vmem>>, %arg3: memref<8x32xf32, #tpu.memory_space<vmem>>, %arg4: memref<100x32xf32, #tpu.memory_space<vmem>>, %arg5: memref<1x32xf32, #tpu.memory_space<vmem>>, %arg6: memref<1x32xf32, #tpu.memory_space<vmem>>, %arg7: memref<2x6x32x16xf32, #tpu.memory_space<vmem>>, %arg8: memref<2x6x1x16xf32, #tpu.memory_space<vmem>>, %arg9: memref<2x2x16x32xf32, #tpu.memory_space<vmem>>, %arg10: memref<2x1x32xf32, #tpu.memory_space<vmem>>, %arg11: memref<2x1x32xf32, #tpu.memory_space<vmem>>, %arg12: memref<2x1x32xf32, #tpu.memory_space<vmem>>, %arg13: memref<2x32x64xf32, #tpu.memory_space<vmem>>, %arg14: memref<2x1x64xf32, #tpu.memory_space<vmem>>, %arg15: memref<2x64x32xf32, #tpu.memory_space<vmem>>, %arg16: memref<2x1x32xf32, #tpu.memory_space<vmem>>, %arg17: memref<2x1x32xf32, #tpu.memory_space<vmem>>, %arg18: memref<2x1x32xf32, #tpu.memory_space<vmem>>, %arg19: memref<32x32xf32, #tpu.memory_space<vmem>>, %arg20: memref<1x32xf32, #tpu.memory_space<vmem>>, %arg21: memref<1x1x32xf32, #tpu.memory_space<vmem>>) attributes {dimension_semantics = [#tpu.dimension_semantics<parallel>], iteration_bounds = array<i64: 2>, scalar_prefetch = 0 : i64, scratch_operands = 0 : i64, tpu.core_type = #tpu.core_type<tc>, window_params = [{transform_indices = @transform_0, window_bounds = array<i64: 1, 8, 1>}, {transform_indices = @transform_1, window_bounds = array<i64: 1, 2, 1, 8>}, {pipeline_mode = #tpu.pipeline_mode<synchronous>, transform_indices = @transform_2, window_bounds = array<i64: 8, 32>}, {pipeline_mode = #tpu.pipeline_mode<synchronous>, transform_indices = @transform_3, window_bounds = array<i64: 100, 32>}, {pipeline_mode = #tpu.pipeline_mode<synchronous>, transform_indices = @transform_4, window_bounds = array<i64: 1, 32>}, {pipeline_mode = #tpu.pipeline_mode<synchronous>, transform_indices = @transform_5, window_bounds = array<i64: 1, 32>}, {pipeline_mode = #tpu.pipeline_mode<synchronous>, transform_indices = @transform_6, window_bounds = array<i64: 2, 6, 32, 16>}, {pipeline_mode = #tpu.pipeline_mode<synchronous>, transform_indices = @transform_7, window_bounds = array<i64: 2, 6, 1, 16>}, {pipeline_mode = #tpu.pipeline_mode<synchronous>, transform_indices = @transform_8, window_bounds = array<i64: 2, 2, 16, 32>}, {pipeline_mode = #tpu.pipeline_mode<synchronous>, transform_indices = @transform_9, window_bounds = array<i64: 2, 1, 32>}, {pipeline_mode = #tpu.pipeline_mode<synchronous>, transform_indices = @transform_10, window_bounds = array<i64: 2, 1, 32>}, {pipeline_mode = #tpu.pipeline_mode<synchronous>, transform_indices = @transform_11, window_bounds = array<i64: 2, 1, 32>}, {pipeline_mode = #tpu.pipeline_mode<synchronous>, transform_indices = @transform_12, window_bounds = array<i64: 2, 32, 64>}, {pipeline_mode = #tpu.pipeline_mode<synchronous>, transform_indices = @transform_13, window_bounds = array<i64: 2, 1, 64>}, {pipeline_mode = #tpu.pipeline_mode<synchronous>, transform_indices = @transform_14, window_bounds = array<i64: 2, 64, 32>}, {pipeline_mode = #tpu.pipeline_mode<synchronous>, transform_indices = @transform_15, window_bounds = array<i64: 2, 1, 32>}, {pipeline_mode = #tpu.pipeline_mode<synchronous>, transform_indices = @transform_16, window_bounds = array<i64: 2, 1, 32>}, {pipeline_mode = #tpu.pipeline_mode<synchronous>, transform_indices = @transform_17, window_bounds = array<i64: 2, 1, 32>}, {pipeline_mode = #tpu.pipeline_mode<synchronous>, transform_indices = @transform_18, window_bounds = array<i64: 32, 32>}, {pipeline_mode = #tpu.pipeline_mode<synchronous>, transform_indices = @transform_19, window_bounds = array<i64: 1, 32>}, {transform_indices = @transform_20, window_bounds = array<i64: 1, 1, 32>}]} {
    %c0 = arith.constant 0 : index
    %c0_0 = arith.constant 0 : index
    %c0_1 = arith.constant 0 : index
    %0 = vector.load %arg1[%c0, %c0_0, %c0_1] : memref<1x8x1xi32, #tpu.memory_space<vmem>>, vector<1x8x1xi32>
    %1 = vector.shape_cast %0 : vector<1x8x1xi32> to vector<8x1xi32>
    %2 = tpu.iota {dimensions = array<i32: 1>} : vector<8x100xi32>
    %3 = vector.broadcast %1 : vector<8x1xi32> to vector<8x100xi32>
    %4 = arith.cmpi eq, %2, %3 : vector<8x100xi32>
    %5 = arith.extui %4 : vector<8x100xi1> to vector<8x100xi32>
    %6 = arith.sitofp %5 : vector<8x100xi32> to vector<8x100xf32>
    %c0_2 = arith.constant 0 : index
    %c0_3 = arith.constant 0 : index
    %7 = vector.load %arg4[%c0_2, %c0_3] : memref<100x32xf32, #tpu.memory_space<vmem>>, vector<100x32xf32>
    %cst = arith.constant dense<0.000000e+00> : vector<8x32xf32>
    %8 = tpu.matmul %6, %7, %cst {dimension_numbers = #tpu.dot_dimension_numbers<[1], [0], [0], [1], [0, 0, 1, 1], [], []>} : vector<8x100xf32>, vector<100x32xf32>, vector<8x32xf32> -> vector<8x32xf32>
    %c0_4 = arith.constant 0 : index
    %c0_5 = arith.constant 0 : index
    %9 = vector.load %arg3[%c0_4, %c0_5] : memref<8x32xf32, #tpu.memory_space<vmem>>, vector<8x32xf32>
    %10 = arith.addf %8, %9 : vector<8x32xf32>
    %c0_6 = arith.constant 0 : index
    %c0_7 = arith.constant 0 : index
    %11 = vector.load %arg5[%c0_6, %c0_7] : memref<1x32xf32, #tpu.memory_space<vmem>>, vector<1x32xf32>
    %c0_8 = arith.constant 0 : index
    %c0_9 = arith.constant 0 : index
    %12 = vector.load %arg6[%c0_8, %c0_9] : memref<1x32xf32, #tpu.memory_space<vmem>>, vector<1x32xf32>
    %cst_10 = arith.constant dense<0.000000e+00> : vector<8xf32>
    %13 = vector.multi_reduction <add>, %10, %cst_10 [1] : vector<8x32xf32> to vector<8xf32>
    %14 = vector.shape_cast %13 : vector<8xf32> to vector<8x1xf32>
    %cst_11 = arith.constant 3.125000e-02 : f32
    %15 = vector.broadcast %cst_11 : f32 to vector<8x1xf32>
    %16 = arith.mulf %14, %15 : vector<8x1xf32>
    %17 = vector.broadcast %16 : vector<8x1xf32> to vector<8x32xf32>
    %18 = arith.subf %10, %17 : vector<8x32xf32>
    %19 = arith.mulf %18, %18 : vector<8x32xf32>
    %cst_12 = arith.constant dense<0.000000e+00> : vector<8xf32>
    %20 = vector.multi_reduction <add>, %19, %cst_12 [1] : vector<8x32xf32> to vector<8xf32>
    %21 = vector.shape_cast %20 : vector<8xf32> to vector<8x1xf32>
    %cst_13 = arith.constant 3.125000e-02 : f32
    %22 = vector.broadcast %cst_13 : f32 to vector<8x1xf32>
    %23 = arith.mulf %21, %22 : vector<8x1xf32>
    %cst_14 = arith.constant 9.99999996E-13 : f32
    %24 = vector.broadcast %cst_14 : f32 to vector<8x1xf32>
    %25 = arith.addf %23, %24 : vector<8x1xf32>
    %26 = math.rsqrt %25 : vector<8x1xf32>
    %27 = vector.broadcast %26 : vector<8x1xf32> to vector<8x32xf32>
    %28 = arith.mulf %18, %27 : vector<8x32xf32>
    %29 = vector.broadcast %11 : vector<1x32xf32> to vector<8x32xf32>
    %30 = arith.mulf %28, %29 : vector<8x32xf32>
    %31 = vector.broadcast %12 : vector<1x32xf32> to vector<8x32xf32>
    %32 = arith.addf %30, %31 : vector<8x32xf32>
    %c0_15 = arith.constant 0 : index
    %c0_16 = arith.constant 0 : index
    %c0_17 = arith.constant 0 : index
    %c0_18 = arith.constant 0 : index
    %33 = vector.load %arg2[%c0_15, %c0_16, %c0_17, %c0_18] : memref<1x2x1x8xf32, #tpu.memory_space<vmem>>, vector<1x2x1x8xf32>
    %34 = vector.shape_cast %33 : vector<1x2x1x8xf32> to vector<2x1x8xf32>
    %35 = vector.shape_cast %32 : vector<8x32xf32> to vector<1x8x32xf32>
    %36 = vector.broadcast %35 : vector<1x8x32xf32> to vector<6x8x32xf32>
    %c0_19 = arith.constant 0 : index
    %c0_20 = arith.constant 0 : index
    %c0_21 = arith.constant 0 : index
    %c0_22 = arith.constant 0 : index
    %37 = vector.load %arg7[%c0_19, %c0_20, %c0_21, %c0_22] : memref<2x6x32x16xf32, #tpu.memory_space<vmem>>, vector<1x6x32x16xf32>
    %38 = vector.shape_cast %37 : vector<1x6x32x16xf32> to vector<6x32x16xf32>
    "tpu.trace_start"() <{level = 10 : i32, message = "gsh,ghd->gsd"}> : () -> ()
    %cst_23 = arith.constant dense<0.000000e+00> : vector<6x8x16xf32>
    %39 = tpu.matmul %36, %38, %cst_23 {dimension_numbers = #tpu.dot_dimension_numbers<[2], [1], [1], [2], [0, 0, 0, 1, 1, 2], [0], [0]>} : vector<6x8x32xf32>, vector<6x32x16xf32>, vector<6x8x16xf32> -> vector<6x8x16xf32>
    "tpu.trace_stop"() : () -> ()
    %c0_24 = arith.constant 0 : index
    %c0_25 = arith.constant 0 : index
    %c0_26 = arith.constant 0 : index
    %c0_27 = arith.constant 0 : index
    %40 = vector.load %arg8[%c0_24, %c0_25, %c0_26, %c0_27] : memref<2x6x1x16xf32, #tpu.memory_space<vmem>>, vector<1x6x1x16xf32>
    %41 = vector.shape_cast %40 : vector<1x6x1x16xf32> to vector<6x1x16xf32>
    %42 = vector.broadcast %41 : vector<6x1x16xf32> to vector<6x8x16xf32>
    %43 = arith.addf %39, %42 : vector<6x8x16xf32>
    %44 = vector.extract_strided_slice %43 {offsets = [0, 0, 0], sizes = [2, 8, 16], strides = [1, 1, 1]} : vector<6x8x16xf32> to vector<2x8x16xf32>
    %45 = vector.extract_strided_slice %43 {offsets = [2, 0, 0], sizes = [2, 8, 16], strides = [1, 1, 1]} : vector<6x8x16xf32> to vector<2x8x16xf32>
    %46 = vector.extract_strided_slice %43 {offsets = [4, 0, 0], sizes = [2, 8, 16], strides = [1, 1, 1]} : vector<6x8x16xf32> to vector<2x8x16xf32>
    "tpu.trace_start"() <{level = 10 : i32, message = "gqd,gkd->gqk"}> : () -> ()
    %cst_28 = arith.constant dense<0.000000e+00> : vector<2x8x8xf32>
    %47 = tpu.matmul %44, %45, %cst_28 {dimension_numbers = #tpu.dot_dimension_numbers<[2], [2], [1], [1], [0, 0, 0, 1, 1, 1], [0], [0]>} : vector<2x8x16xf32>, vector<2x8x16xf32>, vector<2x8x8xf32> -> vector<2x8x8xf32>
    "tpu.trace_stop"() : () -> ()
    %cst_29 = arith.constant 2.500000e-01 : f32
    %48 = vector.broadcast %cst_29 : f32 to vector<2x8x8xf32>
    %49 = arith.mulf %47, %48 : vector<2x8x8xf32>
    %50 = vector.broadcast %34 : vector<2x1x8xf32> to vector<2x8x8xf32>
    %51 = arith.addf %49, %50 : vector<2x8x8xf32>
    %cst_30 = arith.constant dense<0xFF800000> : vector<2x8xf32>
    %52 = vector.multi_reduction <maximumf>, %51, %cst_30 [2] : vector<2x8x8xf32> to vector<2x8xf32>
    %53 = vector.shape_cast %52 : vector<2x8xf32> to vector<2x8x1xf32>
    %54 = vector.broadcast %53 : vector<2x8x1xf32> to vector<2x8x8xf32>
    %55 = arith.subf %51, %54 : vector<2x8x8xf32>
    %56 = math.exp %55 : vector<2x8x8xf32>
    %cst_31 = arith.constant dense<0.000000e+00> : vector<2x8xf32>
    %57 = vector.multi_reduction <add>, %56, %cst_31 [2] : vector<2x8x8xf32> to vector<2x8xf32>
    %58 = vector.shape_cast %57 : vector<2x8xf32> to vector<2x8x1xf32>
    %59 = tpu.reciprocal %58 {approx = true} : vector<2x8x1xf32> -> vector<2x8x1xf32>
    %60 = vector.broadcast %59 : vector<2x8x1xf32> to vector<2x8x8xf32>
    %61 = arith.mulf %56, %60 : vector<2x8x8xf32>
    "tpu.trace_start"() <{level = 10 : i32, message = "gqk,gkd->gqd"}> : () -> ()
    %cst_32 = arith.constant dense<0.000000e+00> : vector<2x8x16xf32>
    %62 = tpu.matmul %61, %46, %cst_32 {dimension_numbers = #tpu.dot_dimension_numbers<[2], [1], [1], [2], [0, 0, 0, 1, 1, 2], [0], [0]>} : vector<2x8x8xf32>, vector<2x8x16xf32>, vector<2x8x16xf32> -> vector<2x8x16xf32>
    "tpu.trace_stop"() : () -> ()
    %c0_33 = arith.constant 0 : index
    %c0_34 = arith.constant 0 : index
    %c0_35 = arith.constant 0 : index
    %c0_36 = arith.constant 0 : index
    %63 = vector.load %arg9[%c0_33, %c0_34, %c0_35, %c0_36] : memref<2x2x16x32xf32, #tpu.memory_space<vmem>>, vector<1x2x16x32xf32>
    %64 = vector.shape_cast %63 : vector<1x2x16x32xf32> to vector<2x16x32xf32>
    "tpu.trace_start"() <{level = 10 : i32, message = "gsd,gdh->gsh"}> : () -> ()
    %cst_37 = arith.constant dense<0.000000e+00> : vector<2x8x32xf32>
    %65 = tpu.matmul %62, %64, %cst_37 {dimension_numbers = #tpu.dot_dimension_numbers<[2], [1], [1], [2], [0, 0, 0, 1, 1, 2], [0], [0]>} : vector<2x8x16xf32>, vector<2x16x32xf32>, vector<2x8x32xf32> -> vector<2x8x32xf32>
    "tpu.trace_stop"() : () -> ()
    %66 = vector.extract_strided_slice %65 {offsets = [0, 0, 0], sizes = [1, 8, 32], strides = [1, 1, 1]} : vector<2x8x32xf32> to vector<1x8x32xf32>
    %67 = vector.shape_cast %66 : vector<1x8x32xf32> to vector<8x32xf32>
    %68 = vector.extract_strided_slice %65 {offsets = [1, 0, 0], sizes = [1, 8, 32], strides = [1, 1, 1]} : vector<2x8x32xf32> to vector<1x8x32xf32>
    %69 = vector.shape_cast %68 : vector<1x8x32xf32> to vector<8x32xf32>
    %70 = arith.addf %67, %69 : vector<8x32xf32>
    %c0_38 = arith.constant 0 : index
    %c0_39 = arith.constant 0 : index
    %c0_40 = arith.constant 0 : index
    %71 = vector.load %arg10[%c0_38, %c0_39, %c0_40] : memref<2x1x32xf32, #tpu.memory_space<vmem>>, vector<1x1x32xf32>
    %72 = vector.shape_cast %71 : vector<1x1x32xf32> to vector<1x32xf32>
    %73 = vector.broadcast %72 : vector<1x32xf32> to vector<8x32xf32>
    %74 = arith.addf %70, %73 : vector<8x32xf32>
    %75 = arith.addf %74, %32 : vector<8x32xf32>
    %c0_41 = arith.constant 0 : index
    %c0_42 = arith.constant 0 : index
    %c0_43 = arith.constant 0 : index
    %76 = vector.load %arg11[%c0_41, %c0_42, %c0_43] : memref<2x1x32xf32, #tpu.memory_space<vmem>>, vector<1x1x32xf32>
    %77 = vector.shape_cast %76 : vector<1x1x32xf32> to vector<1x32xf32>
    %c0_44 = arith.constant 0 : index
    %c0_45 = arith.constant 0 : index
    %c0_46 = arith.constant 0 : index
    %78 = vector.load %arg12[%c0_44, %c0_45, %c0_46] : memref<2x1x32xf32, #tpu.memory_space<vmem>>, vector<1x1x32xf32>
    %79 = vector.shape_cast %78 : vector<1x1x32xf32> to vector<1x32xf32>
    %cst_47 = arith.constant dense<0.000000e+00> : vector<8xf32>
    %80 = vector.multi_reduction <add>, %75, %cst_47 [1] : vector<8x32xf32> to vector<8xf32>
    %81 = vector.shape_cast %80 : vector<8xf32> to vector<8x1xf32>
    %cst_48 = arith.constant 3.125000e-02 : f32
    %82 = vector.broadcast %cst_48 : f32 to vector<8x1xf32>
    %83 = arith.mulf %81, %82 : vector<8x1xf32>
    %84 = vector.broadcast %83 : vector<8x1xf32> to vector<8x32xf32>
    %85 = arith.subf %75, %84 : vector<8x32xf32>
    %86 = arith.mulf %85, %85 : vector<8x32xf32>
    %cst_49 = arith.constant dense<0.000000e+00> : vector<8xf32>
    %87 = vector.multi_reduction <add>, %86, %cst_49 [1] : vector<8x32xf32> to vector<8xf32>
    %88 = vector.shape_cast %87 : vector<8xf32> to vector<8x1xf32>
    %cst_50 = arith.constant 3.125000e-02 : f32
    %89 = vector.broadcast %cst_50 : f32 to vector<8x1xf32>
    %90 = arith.mulf %88, %89 : vector<8x1xf32>
    %cst_51 = arith.constant 9.99999996E-13 : f32
    %91 = vector.broadcast %cst_51 : f32 to vector<8x1xf32>
    %92 = arith.addf %90, %91 : vector<8x1xf32>
    %93 = math.rsqrt %92 : vector<8x1xf32>
    %94 = vector.broadcast %93 : vector<8x1xf32> to vector<8x32xf32>
    %95 = arith.mulf %85, %94 : vector<8x32xf32>
    %96 = vector.broadcast %77 : vector<1x32xf32> to vector<8x32xf32>
    %97 = arith.mulf %95, %96 : vector<8x32xf32>
    %98 = vector.broadcast %79 : vector<1x32xf32> to vector<8x32xf32>
    %99 = arith.addf %97, %98 : vector<8x32xf32>
    %c0_52 = arith.constant 0 : index
    %c0_53 = arith.constant 0 : index
    %c0_54 = arith.constant 0 : index
    %100 = vector.load %arg13[%c0_52, %c0_53, %c0_54] : memref<2x32x64xf32, #tpu.memory_space<vmem>>, vector<1x32x64xf32>
    %101 = vector.shape_cast %100 : vector<1x32x64xf32> to vector<32x64xf32>
    %cst_55 = arith.constant dense<0.000000e+00> : vector<8x64xf32>
    %102 = tpu.matmul %99, %101, %cst_55 {dimension_numbers = #tpu.dot_dimension_numbers<[1], [0], [0], [1], [0, 0, 1, 1], [], []>} : vector<8x32xf32>, vector<32x64xf32>, vector<8x64xf32> -> vector<8x64xf32>
    %c0_56 = arith.constant 0 : index
    %c0_57 = arith.constant 0 : index
    %c0_58 = arith.constant 0 : index
    %103 = vector.load %arg14[%c0_56, %c0_57, %c0_58] : memref<2x1x64xf32, #tpu.memory_space<vmem>>, vector<1x1x64xf32>
    %104 = vector.shape_cast %103 : vector<1x1x64xf32> to vector<1x64xf32>
    %105 = vector.broadcast %104 : vector<1x64xf32> to vector<8x64xf32>
    %106 = arith.addf %102, %105 : vector<8x64xf32>
    %cst_59 = arith.constant 5.000000e-01 : f32
    %107 = vector.broadcast %cst_59 : f32 to vector<8x64xf32>
    %108 = arith.mulf %107, %106 : vector<8x64xf32>
    %cst_60 = arith.constant 4.471500e-02 : f32
    %109 = vector.broadcast %cst_60 : f32 to vector<8x64xf32>
    %110 = arith.mulf %109, %106 : vector<8x64xf32>
    %111 = arith.mulf %110, %106 : vector<8x64xf32>
    %112 = arith.mulf %111, %106 : vector<8x64xf32>
    %113 = arith.addf %106, %112 : vector<8x64xf32>
    %cst_61 = arith.constant 0.797884583 : f32
    %114 = vector.broadcast %cst_61 : f32 to vector<8x64xf32>
    %115 = arith.mulf %114, %113 : vector<8x64xf32>
    %116 = math.tanh %115 : vector<8x64xf32>
    %cst_62 = arith.constant 1.000000e+00 : f32
    %117 = vector.broadcast %cst_62 : f32 to vector<8x64xf32>
    %118 = arith.addf %117, %116 : vector<8x64xf32>
    %119 = arith.mulf %108, %118 : vector<8x64xf32>
    %c0_63 = arith.constant 0 : index
    %c0_64 = arith.constant 0 : index
    %c0_65 = arith.constant 0 : index
    %120 = vector.load %arg15[%c0_63, %c0_64, %c0_65] : memref<2x64x32xf32, #tpu.memory_space<vmem>>, vector<1x64x32xf32>
    %121 = vector.shape_cast %120 : vector<1x64x32xf32> to vector<64x32xf32>
    %cst_66 = arith.constant dense<0.000000e+00> : vector<8x32xf32>
    %122 = tpu.matmul %119, %121, %cst_66 {dimension_numbers = #tpu.dot_dimension_numbers<[1], [0], [0], [1], [0, 0, 1, 1], [], []>} : vector<8x64xf32>, vector<64x32xf32>, vector<8x32xf32> -> vector<8x32xf32>
    %c0_67 = arith.constant 0 : index
    %c0_68 = arith.constant 0 : index
    %c0_69 = arith.constant 0 : index
    %123 = vector.load %arg16[%c0_67, %c0_68, %c0_69] : memref<2x1x32xf32, #tpu.memory_space<vmem>>, vector<1x1x32xf32>
    %124 = vector.shape_cast %123 : vector<1x1x32xf32> to vector<1x32xf32>
    %125 = vector.broadcast %124 : vector<1x32xf32> to vector<8x32xf32>
    %126 = arith.addf %122, %125 : vector<8x32xf32>
    %127 = arith.addf %126, %99 : vector<8x32xf32>
    %c0_70 = arith.constant 0 : index
    %c0_71 = arith.constant 0 : index
    %c0_72 = arith.constant 0 : index
    %128 = vector.load %arg17[%c0_70, %c0_71, %c0_72] : memref<2x1x32xf32, #tpu.memory_space<vmem>>, vector<1x1x32xf32>
    %129 = vector.shape_cast %128 : vector<1x1x32xf32> to vector<1x32xf32>
    %c0_73 = arith.constant 0 : index
    %c0_74 = arith.constant 0 : index
    %c0_75 = arith.constant 0 : index
    %130 = vector.load %arg18[%c0_73, %c0_74, %c0_75] : memref<2x1x32xf32, #tpu.memory_space<vmem>>, vector<1x1x32xf32>
    %131 = vector.shape_cast %130 : vector<1x1x32xf32> to vector<1x32xf32>
    %cst_76 = arith.constant dense<0.000000e+00> : vector<8xf32>
    %132 = vector.multi_reduction <add>, %127, %cst_76 [1] : vector<8x32xf32> to vector<8xf32>
    %133 = vector.shape_cast %132 : vector<8xf32> to vector<8x1xf32>
    %cst_77 = arith.constant 3.125000e-02 : f32
    %134 = vector.broadcast %cst_77 : f32 to vector<8x1xf32>
    %135 = arith.mulf %133, %134 : vector<8x1xf32>
    %136 = vector.broadcast %135 : vector<8x1xf32> to vector<8x32xf32>
    %137 = arith.subf %127, %136 : vector<8x32xf32>
    %138 = arith.mulf %137, %137 : vector<8x32xf32>
    %cst_78 = arith.constant dense<0.000000e+00> : vector<8xf32>
    %139 = vector.multi_reduction <add>, %138, %cst_78 [1] : vector<8x32xf32> to vector<8xf32>
    %140 = vector.shape_cast %139 : vector<8xf32> to vector<8x1xf32>
    %cst_79 = arith.constant 3.125000e-02 : f32
    %141 = vector.broadcast %cst_79 : f32 to vector<8x1xf32>
    %142 = arith.mulf %140, %141 : vector<8x1xf32>
    %cst_80 = arith.constant 9.99999996E-13 : f32
    %143 = vector.broadcast %cst_80 : f32 to vector<8x1xf32>
    %144 = arith.addf %142, %143 : vector<8x1xf32>
    %145 = math.rsqrt %144 : vector<8x1xf32>
    %146 = vector.broadcast %145 : vector<8x1xf32> to vector<8x32xf32>
    %147 = arith.mulf %137, %146 : vector<8x32xf32>
    %148 = vector.broadcast %129 : vector<1x32xf32> to vector<8x32xf32>
    %149 = arith.mulf %147, %148 : vector<8x32xf32>
    %150 = vector.broadcast %131 : vector<1x32xf32> to vector<8x32xf32>
    %151 = arith.addf %149, %150 : vector<8x32xf32>
    %152 = vector.shape_cast %151 : vector<8x32xf32> to vector<1x8x32xf32>
    %153 = vector.broadcast %152 : vector<1x8x32xf32> to vector<6x8x32xf32>
    %c1 = arith.constant 1 : index
    %c0_81 = arith.constant 0 : index
    %c0_82 = arith.constant 0 : index
    %c0_83 = arith.constant 0 : index
    %154 = vector.load %arg7[%c1, %c0_81, %c0_82, %c0_83] : memref<2x6x32x16xf32, #tpu.memory_space<vmem>>, vector<1x6x32x16xf32>
    %155 = vector.shape_cast %154 : vector<1x6x32x16xf32> to vector<6x32x16xf32>
    "tpu.trace_start"() <{level = 10 : i32, message = "gsh,ghd->gsd"}> : () -> ()
    %cst_84 = arith.constant dense<0.000000e+00> : vector<6x8x16xf32>
    %156 = tpu.matmul %153, %155, %cst_84 {dimension_numbers = #tpu.dot_dimension_numbers<[2], [1], [1], [2], [0, 0, 0, 1, 1, 2], [0], [0]>} : vector<6x8x32xf32>, vector<6x32x16xf32>, vector<6x8x16xf32> -> vector<6x8x16xf32>
    "tpu.trace_stop"() : () -> ()
    %c1_85 = arith.constant 1 : index
    %c0_86 = arith.constant 0 : index
    %c0_87 = arith.constant 0 : index
    %c0_88 = arith.constant 0 : index
    %157 = vector.load %arg8[%c1_85, %c0_86, %c0_87, %c0_88] : memref<2x6x1x16xf32, #tpu.memory_space<vmem>>, vector<1x6x1x16xf32>
    %158 = vector.shape_cast %157 : vector<1x6x1x16xf32> to vector<6x1x16xf32>
    %159 = vector.broadcast %158 : vector<6x1x16xf32> to vector<6x8x16xf32>
    %160 = arith.addf %156, %159 : vector<6x8x16xf32>
    %161 = vector.extract_strided_slice %160 {offsets = [0, 0, 0], sizes = [2, 8, 16], strides = [1, 1, 1]} : vector<6x8x16xf32> to vector<2x8x16xf32>
    %162 = vector.extract_strided_slice %160 {offsets = [2, 0, 0], sizes = [2, 8, 16], strides = [1, 1, 1]} : vector<6x8x16xf32> to vector<2x8x16xf32>
    %163 = vector.extract_strided_slice %160 {offsets = [4, 0, 0], sizes = [2, 8, 16], strides = [1, 1, 1]} : vector<6x8x16xf32> to vector<2x8x16xf32>
    "tpu.trace_start"() <{level = 10 : i32, message = "gqd,gkd->gqk"}> : () -> ()
    %cst_89 = arith.constant dense<0.000000e+00> : vector<2x8x8xf32>
    %164 = tpu.matmul %161, %162, %cst_89 {dimension_numbers = #tpu.dot_dimension_numbers<[2], [2], [1], [1], [0, 0, 0, 1, 1, 1], [0], [0]>} : vector<2x8x16xf32>, vector<2x8x16xf32>, vector<2x8x8xf32> -> vector<2x8x8xf32>
    "tpu.trace_stop"() : () -> ()
    %cst_90 = arith.constant 2.500000e-01 : f32
    %165 = vector.broadcast %cst_90 : f32 to vector<2x8x8xf32>
    %166 = arith.mulf %164, %165 : vector<2x8x8xf32>
    %167 = vector.broadcast %34 : vector<2x1x8xf32> to vector<2x8x8xf32>
    %168 = arith.addf %166, %167 : vector<2x8x8xf32>
    %cst_91 = arith.constant dense<0xFF800000> : vector<2x8xf32>
    %169 = vector.multi_reduction <maximumf>, %168, %cst_91 [2] : vector<2x8x8xf32> to vector<2x8xf32>
    %170 = vector.shape_cast %169 : vector<2x8xf32> to vector<2x8x1xf32>
    %171 = vector.broadcast %170 : vector<2x8x1xf32> to vector<2x8x8xf32>
    %172 = arith.subf %168, %171 : vector<2x8x8xf32>
    %173 = math.exp %172 : vector<2x8x8xf32>
    %cst_92 = arith.constant dense<0.000000e+00> : vector<2x8xf32>
    %174 = vector.multi_reduction <add>, %173, %cst_92 [2] : vector<2x8x8xf32> to vector<2x8xf32>
    %175 = vector.shape_cast %174 : vector<2x8xf32> to vector<2x8x1xf32>
    %176 = tpu.reciprocal %175 {approx = true} : vector<2x8x1xf32> -> vector<2x8x1xf32>
    %177 = vector.broadcast %176 : vector<2x8x1xf32> to vector<2x8x8xf32>
    %178 = arith.mulf %173, %177 : vector<2x8x8xf32>
    "tpu.trace_start"() <{level = 10 : i32, message = "gqk,gkd->gqd"}> : () -> ()
    %cst_93 = arith.constant dense<0.000000e+00> : vector<2x8x16xf32>
    %179 = tpu.matmul %178, %163, %cst_93 {dimension_numbers = #tpu.dot_dimension_numbers<[2], [1], [1], [2], [0, 0, 0, 1, 1, 2], [0], [0]>} : vector<2x8x8xf32>, vector<2x8x16xf32>, vector<2x8x16xf32> -> vector<2x8x16xf32>
    "tpu.trace_stop"() : () -> ()
    %c1_94 = arith.constant 1 : index
    %c0_95 = arith.constant 0 : index
    %c0_96 = arith.constant 0 : index
    %c0_97 = arith.constant 0 : index
    %180 = vector.load %arg9[%c1_94, %c0_95, %c0_96, %c0_97] : memref<2x2x16x32xf32, #tpu.memory_space<vmem>>, vector<1x2x16x32xf32>
    %181 = vector.shape_cast %180 : vector<1x2x16x32xf32> to vector<2x16x32xf32>
    "tpu.trace_start"() <{level = 10 : i32, message = "gsd,gdh->gsh"}> : () -> ()
    %cst_98 = arith.constant dense<0.000000e+00> : vector<2x8x32xf32>
    %182 = tpu.matmul %179, %181, %cst_98 {dimension_numbers = #tpu.dot_dimension_numbers<[2], [1], [1], [2], [0, 0, 0, 1, 1, 2], [0], [0]>} : vector<2x8x16xf32>, vector<2x16x32xf32>, vector<2x8x32xf32> -> vector<2x8x32xf32>
    "tpu.trace_stop"() : () -> ()
    %183 = vector.extract_strided_slice %182 {offsets = [0, 0, 0], sizes = [1, 8, 32], strides = [1, 1, 1]} : vector<2x8x32xf32> to vector<1x8x32xf32>
    %184 = vector.shape_cast %183 : vector<1x8x32xf32> to vector<8x32xf32>
    %185 = vector.extract_strided_slice %182 {offsets = [1, 0, 0], sizes = [1, 8, 32], strides = [1, 1, 1]} : vector<2x8x32xf32> to vector<1x8x32xf32>
    %186 = vector.shape_cast %185 : vector<1x8x32xf32> to vector<8x32xf32>
    %187 = arith.addf %184, %186 : vector<8x32xf32>
    %c1_99 = arith.constant 1 : index
    %c0_100 = arith.constant 0 : index
    %c0_101 = arith.constant 0 : index
    %188 = vector.load %arg10[%c1_99, %c0_100, %c0_101] : memref<2x1x32xf32, #tpu.memory_space<vmem>>, vector<1x1x32xf32>
    %189 = vector.shape_cast %188 : vector<1x1x32xf32> to vector<1x32xf32>
    %190 = vector.broadcast %189 : vector<1x32xf32> to vector<8x32xf32>
    %191 = arith.addf %187, %190 : vector<8x32xf32>
    %192 = arith.addf %191, %151 : vector<8x32xf32>
    %c1_102 = arith.constant 1 : index
    %c0_103 = arith.constant 0 : index
    %c0_104 = arith.constant 0 : index
    %193 = vector.load %arg11[%c1_102, %c0_103, %c0_104] : memref<2x1x32xf32, #tpu.memory_space<vmem>>, vector<1x1x32xf32>
    %194 = vector.shape_cast %193 : vector<1x1x32xf32> to vector<1x32xf32>
    %c1_105 = arith.constant 1 : index
    %c0_106 = arith.constant 0 : index
    %c0_107 = arith.constant 0 : index
    %195 = vector.load %arg12[%c1_105, %c0_106, %c0_107] : memref<2x1x32xf32, #tpu.memory_space<vmem>>, vector<1x1x32xf32>
    %196 = vector.shape_cast %195 : vector<1x1x32xf32> to vector<1x32xf32>
    %cst_108 = arith.constant dense<0.000000e+00> : vector<8xf32>
    %197 = vector.multi_reduction <add>, %192, %cst_108 [1] : vector<8x32xf32> to vector<8xf32>
    %198 = vector.shape_cast %197 : vector<8xf32> to vector<8x1xf32>
    %cst_109 = arith.constant 3.125000e-02 : f32
    %199 = vector.broadcast %cst_109 : f32 to vector<8x1xf32>
    %200 = arith.mulf %198, %199 : vector<8x1xf32>
    %201 = vector.broadcast %200 : vector<8x1xf32> to vector<8x32xf32>
    %202 = arith.subf %192, %201 : vector<8x32xf32>
    %203 = arith.mulf %202, %202 : vector<8x32xf32>
    %cst_110 = arith.constant dense<0.000000e+00> : vector<8xf32>
    %204 = vector.multi_reduction <add>, %203, %cst_110 [1] : vector<8x32xf32> to vector<8xf32>
    %205 = vector.shape_cast %204 : vector<8xf32> to vector<8x1xf32>
    %cst_111 = arith.constant 3.125000e-02 : f32
    %206 = vector.broadcast %cst_111 : f32 to vector<8x1xf32>
    %207 = arith.mulf %205, %206 : vector<8x1xf32>
    %cst_112 = arith.constant 9.99999996E-13 : f32
    %208 = vector.broadcast %cst_112 : f32 to vector<8x1xf32>
    %209 = arith.addf %207, %208 : vector<8x1xf32>
    %210 = math.rsqrt %209 : vector<8x1xf32>
    %211 = vector.broadcast %210 : vector<8x1xf32> to vector<8x32xf32>
    %212 = arith.mulf %202, %211 : vector<8x32xf32>
    %213 = vector.broadcast %194 : vector<1x32xf32> to vector<8x32xf32>
    %214 = arith.mulf %212, %213 : vector<8x32xf32>
    %215 = vector.broadcast %196 : vector<1x32xf32> to vector<8x32xf32>
    %216 = arith.addf %214, %215 : vector<8x32xf32>
    %c1_113 = arith.constant 1 : index
    %c0_114 = arith.constant 0 : index
    %c0_115 = arith.constant 0 : index
    %217 = vector.load %arg13[%c1_113, %c0_114, %c0_115] : memref<2x32x64xf32, #tpu.memory_space<vmem>>, vector<1x32x64xf32>
    %218 = vector.shape_cast %217 : vector<1x32x64xf32> to vector<32x64xf32>
    %cst_116 = arith.constant dense<0.000000e+00> : vector<8x64xf32>
    %219 = tpu.matmul %216, %218, %cst_116 {dimension_numbers = #tpu.dot_dimension_numbers<[1], [0], [0], [1], [0, 0, 1, 1], [], []>} : vector<8x32xf32>, vector<32x64xf32>, vector<8x64xf32> -> vector<8x64xf32>
    %c1_117 = arith.constant 1 : index
    %c0_118 = arith.constant 0 : index
    %c0_119 = arith.constant 0 : index
    %220 = vector.load %arg14[%c1_117, %c0_118, %c0_119] : memref<2x1x64xf32, #tpu.memory_space<vmem>>, vector<1x1x64xf32>
    %221 = vector.shape_cast %220 : vector<1x1x64xf32> to vector<1x64xf32>
    %222 = vector.broadcast %221 : vector<1x64xf32> to vector<8x64xf32>
    %223 = arith.addf %219, %222 : vector<8x64xf32>
    %cst_120 = arith.constant 5.000000e-01 : f32
    %224 = vector.broadcast %cst_120 : f32 to vector<8x64xf32>
    %225 = arith.mulf %224, %223 : vector<8x64xf32>
    %cst_121 = arith.constant 4.471500e-02 : f32
    %226 = vector.broadcast %cst_121 : f32 to vector<8x64xf32>
    %227 = arith.mulf %226, %223 : vector<8x64xf32>
    %228 = arith.mulf %227, %223 : vector<8x64xf32>
    %229 = arith.mulf %228, %223 : vector<8x64xf32>
    %230 = arith.addf %223, %229 : vector<8x64xf32>
    %cst_122 = arith.constant 0.797884583 : f32
    %231 = vector.broadcast %cst_122 : f32 to vector<8x64xf32>
    %232 = arith.mulf %231, %230 : vector<8x64xf32>
    %233 = math.tanh %232 : vector<8x64xf32>
    %cst_123 = arith.constant 1.000000e+00 : f32
    %234 = vector.broadcast %cst_123 : f32 to vector<8x64xf32>
    %235 = arith.addf %234, %233 : vector<8x64xf32>
    %236 = arith.mulf %225, %235 : vector<8x64xf32>
    %c1_124 = arith.constant 1 : index
    %c0_125 = arith.constant 0 : index
    %c0_126 = arith.constant 0 : index
    %237 = vector.load %arg15[%c1_124, %c0_125, %c0_126] : memref<2x64x32xf32, #tpu.memory_space<vmem>>, vector<1x64x32xf32>
    %238 = vector.shape_cast %237 : vector<1x64x32xf32> to vector<64x32xf32>
    %cst_127 = arith.constant dense<0.000000e+00> : vector<8x32xf32>
    %239 = tpu.matmul %236, %238, %cst_127 {dimension_numbers = #tpu.dot_dimension_numbers<[1], [0], [0], [1], [0, 0, 1, 1], [], []>} : vector<8x64xf32>, vector<64x32xf32>, vector<8x32xf32> -> vector<8x32xf32>
    %c1_128 = arith.constant 1 : index
    %c0_129 = arith.constant 0 : index
    %c0_130 = arith.constant 0 : index
    %240 = vector.load %arg16[%c1_128, %c0_129, %c0_130] : memref<2x1x32xf32, #tpu.memory_space<vmem>>, vector<1x1x32xf32>
    %241 = vector.shape_cast %240 : vector<1x1x32xf32> to vector<1x32xf32>
    %242 = vector.broadcast %241 : vector<1x32xf32> to vector<8x32xf32>
    %243 = arith.addf %239, %242 : vector<8x32xf32>
    %244 = arith.addf %243, %216 : vector<8x32xf32>
    %c1_131 = arith.constant 1 : index
    %c0_132 = arith.constant 0 : index
    %c0_133 = arith.constant 0 : index
    %245 = vector.load %arg17[%c1_131, %c0_132, %c0_133] : memref<2x1x32xf32, #tpu.memory_space<vmem>>, vector<1x1x32xf32>
    %246 = vector.shape_cast %245 : vector<1x1x32xf32> to vector<1x32xf32>
    %c1_134 = arith.constant 1 : index
    %c0_135 = arith.constant 0 : index
    %c0_136 = arith.constant 0 : index
    %247 = vector.load %arg18[%c1_134, %c0_135, %c0_136] : memref<2x1x32xf32, #tpu.memory_space<vmem>>, vector<1x1x32xf32>
    %248 = vector.shape_cast %247 : vector<1x1x32xf32> to vector<1x32xf32>
    %cst_137 = arith.constant dense<0.000000e+00> : vector<8xf32>
    %249 = vector.multi_reduction <add>, %244, %cst_137 [1] : vector<8x32xf32> to vector<8xf32>
    %250 = vector.shape_cast %249 : vector<8xf32> to vector<8x1xf32>
    %cst_138 = arith.constant 3.125000e-02 : f32
    %251 = vector.broadcast %cst_138 : f32 to vector<8x1xf32>
    %252 = arith.mulf %250, %251 : vector<8x1xf32>
    %253 = vector.broadcast %252 : vector<8x1xf32> to vector<8x32xf32>
    %254 = arith.subf %244, %253 : vector<8x32xf32>
    %255 = arith.mulf %254, %254 : vector<8x32xf32>
    %cst_139 = arith.constant dense<0.000000e+00> : vector<8xf32>
    %256 = vector.multi_reduction <add>, %255, %cst_139 [1] : vector<8x32xf32> to vector<8xf32>
    %257 = vector.shape_cast %256 : vector<8xf32> to vector<8x1xf32>
    %cst_140 = arith.constant 3.125000e-02 : f32
    %258 = vector.broadcast %cst_140 : f32 to vector<8x1xf32>
    %259 = arith.mulf %257, %258 : vector<8x1xf32>
    %cst_141 = arith.constant 9.99999996E-13 : f32
    %260 = vector.broadcast %cst_141 : f32 to vector<8x1xf32>
    %261 = arith.addf %259, %260 : vector<8x1xf32>
    %262 = math.rsqrt %261 : vector<8x1xf32>
    %263 = vector.broadcast %262 : vector<8x1xf32> to vector<8x32xf32>
    %264 = arith.mulf %254, %263 : vector<8x32xf32>
    %265 = vector.broadcast %246 : vector<1x32xf32> to vector<8x32xf32>
    %266 = arith.mulf %264, %265 : vector<8x32xf32>
    %267 = vector.broadcast %248 : vector<1x32xf32> to vector<8x32xf32>
    %268 = arith.addf %266, %267 : vector<8x32xf32>
    %269 = vector.extract_strided_slice %268 {offsets = [0, 0], sizes = [1, 32], strides = [1, 1]} : vector<8x32xf32> to vector<1x32xf32>
    %c0_142 = arith.constant 0 : index
    %c0_143 = arith.constant 0 : index
    %270 = vector.load %arg19[%c0_142, %c0_143] : memref<32x32xf32, #tpu.memory_space<vmem>>, vector<32x32xf32>
    %cst_144 = arith.constant dense<0.000000e+00> : vector<1x32xf32>
    %271 = tpu.matmul %269, %270, %cst_144 {dimension_numbers = #tpu.dot_dimension_numbers<[1], [0], [0], [1], [0, 0, 1, 1], [], []>} : vector<1x32xf32>, vector<32x32xf32>, vector<1x32xf32> -> vector<1x32xf32>
    %c0_145 = arith.constant 0 : index
    %c0_146 = arith.constant 0 : index
    %272 = vector.load %arg20[%c0_145, %c0_146] : memref<1x32xf32, #tpu.memory_space<vmem>>, vector<1x32xf32>
    %273 = arith.addf %271, %272 : vector<1x32xf32>
    %274 = math.tanh %273 : vector<1x32xf32>
    %c0_147 = arith.constant 0 : index
    %c0_148 = arith.constant 0 : index
    %c0_149 = arith.constant 0 : index
    %275 = vector.load %arg21[%c0_147, %c0_148, %c0_149] : memref<1x1x32xf32, #tpu.memory_space<vmem>>, vector<1x1x32xf32>
    %276 = vector.shape_cast %275 : vector<1x1x32xf32> to vector<1x32xf32>
    %277 = vector.shape_cast %274 : vector<1x32xf32> to vector<1x1x32xf32>
    tpu.vector_store %arg21[%c0_147, %c0_148, %c0_149], %277 {strides = array<i32>} : memref<1x1x32xf32, #tpu.memory_space<vmem>>, vector<1x1x32xf32>,
    return
  }
  func.func @transform_0(%arg0: i32) -> (i32, i32, i32) {
    %c0_i32 = arith.constant 0 : i32
    %c0_i32_0 = arith.constant 0 : i32
    %c0_i32_1 = arith.constant 0 : i32
    return %arg0, %c0_i32, %c0_i32_0 : i32, i32, i32
  }
  func.func @transform_1(%arg0: i32) -> (i32, i32, i32, i32) {
    %c0_i32 = arith.constant 0 : i32
    %c0_i32_0 = arith.constant 0 : i32
    %c0_i32_1 = arith.constant 0 : i32
    %c0_i32_2 = arith.constant 0 : i32
    return %arg0, %c0_i32, %c0_i32_0, %c0_i32_1 : i32, i32, i32, i32
  }
  func.func @transform_2(%arg0: i32) -> (i32, i32) {
    %c0_i32 = arith.constant 0 : i32
    %c0_i32_0 = arith.constant 0 : i32
    %c0_i32_1 = arith.constant 0 : i32
    return %c0_i32, %c0_i32_0 : i32, i32
  }
  func.func @transform_3(%arg0: i32) -> (i32, i32) {
    %c0_i32 = arith.constant 0 : i32
    %c0_i32_0 = arith.constant 0 : i32
    %c0_i32_1 = arith.constant 0 : i32
    return %c0_i32, %c0_i32_0 : i32, i32
  }
  func.func @transform_4(%arg0: i32) -> (i32, i32) {
    %c0_i32 = arith.constant 0 : i32
    %c0_i32_0 = arith.constant 0 : i32
    %c0_i32_1 = arith.constant 0 : i32
    return %c0_i32, %c0_i32_0 : i32, i32
  }
  func.func @transform_5(%arg0: i32) -> (i32, i32) {
    %c0_i32 = arith.constant 0 : i32
    %c0_i32_0 = arith.constant 0 : i32
    %c0_i32_1 = arith.constant 0 : i32
    return %c0_i32, %c0_i32_0 : i32, i32
  }
  func.func @transform_6(%arg0: i32) -> (i32, i32, i32, i32) {
    %c0_i32 = arith.constant 0 : i32
    %c0_i32_0 = arith.constant 0 : i32
    %c0_i32_1 = arith.constant 0 : i32
    %c0_i32_2 = arith.constant 0 : i32
    %c0_i32_3 = arith.constant 0 : i32
    return %c0_i32, %c0_i32_0, %c0_i32_1, %c0_i32_2 : i32, i32, i32, i32
  }
  func.func @transform_7(%arg0: i32) -> (i32, i32, i32, i32) {
    %c0_i32 = arith.constant 0 : i32
    %c0_i32_0 = arith.constant 0 : i32
    %c0_i32_1 = arith.constant 0 : i32
    %c0_i32_2 = arith.constant 0 : i32
    %c0_i32_3 = arith.constant 0 : i32
    return %c0_i32, %c0_i32_0, %c0_i32_1, %c0_i32_2 : i32, i32, i32, i32
  }
  func.func @transform_8(%arg0: i32) -> (i32, i32, i32, i32) {
    %c0_i32 = arith.constant 0 : i32
    %c0_i32_0 = arith.constant 0 : i32
    %c0_i32_1 = arith.constant 0 : i32
    %c0_i32_2 = arith.constant 0 : i32
    %c0_i32_3 = arith.constant 0 : i32
    return %c0_i32, %c0_i32_0, %c0_i32_1, %c0_i32_2 : i32, i32, i32, i32
  }
  func.func @transform_9(%arg0: i32) -> (i32, i32, i32) {
    %c0_i32 = arith.constant 0 : i32
    %c0_i32_0 = arith.constant 0 : i32
    %c0_i32_1 = arith.constant 0 : i32
    %c0_i32_2 = arith.constant 0 : i32
    return %c0_i32, %c0_i32_0, %c0_i32_1 : i32, i32, i32
  }
  func.func @transform_10(%arg0: i32) -> (i32, i32, i32) {
    %c0_i32 = arith.constant 0 : i32
    %c0_i32_0 = arith.constant 0 : i32
    %c0_i32_1 = arith.constant 0 : i32
    %c0_i32_2 = arith.constant 0 : i32
    return %c0_i32, %c0_i32_0, %c0_i32_1 : i32, i32, i32
  }
  func.func @transform_11(%arg0: i32) -> (i32, i32, i32) {
    %c0_i32 = arith.constant 0 : i32
    %c0_i32_0 = arith.constant 0 : i32
    %c0_i32_1 = arith.constant 0 : i32
    %c0_i32_2 = arith.constant 0 : i32
    return %c0_i32, %c0_i32_0, %c0_i32_1 : i32, i32, i32
  }
  func.func @transform_12(%arg0: i32) -> (i32, i32, i32) {
    %c0_i32 = arith.constant 0 : i32
    %c0_i32_0 = arith.constant 0 : i32
    %c0_i32_1 = arith.constant 0 : i32
    %c0_i32_2 = arith.constant 0 : i32
    return %c0_i32, %c0_i32_0, %c0_i32_1 : i32, i32, i32
  }
  func.func @transform_13(%arg0: i32) -> (i32, i32, i32) {
    %c0_i32 = arith.constant 0 : i32
    %c0_i32_0 = arith.constant 0 : i32
    %c0_i32_1 = arith.constant 0 : i32
    %c0_i32_2 = arith.constant 0 : i32
    return %c0_i32, %c0_i32_0, %c0_i32_1 : i32, i32, i32
  }
  func.func @transform_14(%arg0: i32) -> (i32, i32, i32) {
    %c0_i32 = arith.constant 0 : i32
    %c0_i32_0 = arith.constant 0 : i32
    %c0_i32_1 = arith.constant 0 : i32
    %c0_i32_2 = arith.constant 0 : i32
    return %c0_i32, %c0_i32_0, %c0_i32_1 : i32, i32, i32
  }
  func.func @transform_15(%arg0: i32) -> (i32, i32, i32) {
    %c0_i32 = arith.constant 0 : i32
    %c0_i32_0 = arith.constant 0 : i32
    %c0_i32_1 = arith.constant 0 : i32
    %c0_i32_2 = arith.constant 0 : i32
    return %c0_i32, %c0_i32_0, %c0_i32_1 : i32, i32, i32
  }
  func.func @transform_16(%arg0: i32) -> (i32, i32, i32) {
    %c0_i32 = arith.constant 0 : i32
    %c0_i32_0 = arith.constant 0 : i32
    %c0_i32_1 = arith.constant 0 : i32
    %c0_i32_2 = arith.constant 0 : i32
    return %c0_i32, %c0_i32_0, %c0_i32_1 : i32, i32, i32
  }
  func.func @transform_17(%arg0: i32) -> (i32, i32, i32) {
    %c0_i32 = arith.constant 0 : i32
    %c0_i32_0 = arith.constant 0 : i32
    %c0_i32_1 = arith.constant 0 : i32
    %c0_i32_2 = arith.constant 0 : i32
    return %c0_i32, %c0_i32_0, %c0_i32_1 : i32, i32, i32
  }
  func.func @transform_18(%arg0: i32) -> (i32, i32) {
    %c0_i32 = arith.constant 0 : i32
    %c0_i32_0 = arith.constant 0 : i32
    %c0_i32_1 = arith.constant 0 : i32
    return %c0_i32, %c0_i32_0 : i32, i32
  }
  func.func @transform_19(%arg0: i32) -> (i32, i32) {
    %c0_i32 = arith.constant 0 : i32
    %c0_i32_0 = arith.constant 0 : i32
    %c0_i32_1 = arith.constant 0 : i32
    return %c0_i32, %c0_i32_0 : i32, i32
  }
  func.func @transform_20(%arg0: i32) -> (i32, i32, i32) {
    %c0_i32 = arith.constant 0 : i32
    %c0_i32_0 = arith.constant 0 : i32
    %c0_i32_1 = arith.constant 0 : i32
    return %arg0, %c0_i32, %c0_i32_0 : i32, i32, i32
  }
}

</mosaic_0001>

<bundles_post_ra>
// kernel: bert_pooled_output.1
= control target key start
LH: loop header
LB: loop body
LE: loop exit
PB: predicated region body
PF: predicated region fallthrough
CT: control target
= control target key end

     0   :  { %s2775_s0 = inlined_call_operand.vmem [shape: s32[2,8,1], index: 0, kind: input, shape index: {}]   ;;  %s2776_s1 = inlined_call_operand.vmem [shape: f32[2,2,1,8], index: 1, kind: input, shape index: {}]   ;;  %s2777_s2 = inlined_call_operand.vmem [shape: f32[8,32], index: 2, kind: input, shape index: {}]   ;;  %s2778_s3 = inlined_call_operand.vmem [shape: f32[100,32], index: 3, kind: input, shape index: {}]   ;;  %s2779_s4 = inlined_call_operand.vmem [shape: f32[1,32], index: 4, kind: input, shape index: {}]   ;;  %s2780_s5 = inlined_call_operand.vmem [shape: f32[1,32], index: 5, kind: input, shape index: {}]   ;;  %s2781_s6 = inlined_call_operand.vmem [shape: f32[2,6,32,16], index: 6, kind: input, shape index: {}]   ;;  %s2782_s7 = inlined_call_operand.vmem [shape: f32[2,6,1,16], index: 7, kind: input, shape index: {}]   ;;  %s2783_s8 = inlined_call_operand.vmem [shape: f32[2,2,16,32], index: 8, kind: input, shape index: {}]   ;;  %s2784_s9 = inlined_call_operand.vmem [shape: f32[2,1,32], index: 9, kind: input, shape index: {}]   ;;  %s2785_s10 = inlined_call_operand.vmem [shape: f32[2,1,32], index: 10, kind: input, shape index: {}]   ;;  %s2786_s11 = inlined_call_operand.vmem [shape: f32[2,1,32], index: 11, kind: input, shape index: {}]   ;;  %s2787_s12 = inlined_call_operand.vmem [shape: f32[2,32,64], index: 12, kind: input, shape index: {}]   ;;  %s2788_s13 = inlined_call_operand.vmem [shape: f32[2,1,64], index: 13, kind: input, shape index: {}]   ;;  %s2789_s14 = inlined_call_operand.vmem [shape: f32[2,64,32], index: 14, kind: input, shape index: {}]   ;;  %s2790_s15 = inlined_call_operand.vmem [shape: f32[2,1,32], index: 15, kind: input, shape index: {}]   ;;  %s2791_s16 = inlined_call_operand.vmem [shape: f32[2,1,32], index: 16, kind: input, shape index: {}]   ;;  %s2792_s17 = inlined_call_operand.vmem [shape: f32[2,1,32], index: 17, kind: input, shape index: {}]   ;;  %s2793_s18 = inlined_call_operand.vmem [shape: f32[32,32], index: 18, kind: input, shape index: {}]   ;;  %s2794_s19 = inlined_call_operand.vmem [shape: f32[1,32], index: 19, kind: input, shape index: {}]   ;;  %s2795_s20 = inlined_call_operand.hbm [shape: f32[2,1,32], index: 20, kind: output, shape index: {}]  }
   0x1   :  { %2808 = sst [smem:[#allocation14_spill]] %s2775_s0 }
   0x2   :  { %2809 = sst [smem:[#allocation15_spill]] %s2776_s1 }
   0x3   :  { %2810 = sst [smem:[#allocation16_spill]] %s2777_s2 }
   0x4   :  { %2811 = sst [smem:[#allocation17_spill]] %s2778_s3 }
   0x5   :  { %2812 = sst [smem:[#allocation18_spill]] %s2779_s4 }
   0x6   :  { %2813 = sst [smem:[#allocation19_spill]] %s2794_s19 }
   0x7   :  { %2814 = sst [smem:[#allocation20_spill]] %s2795_s20 }
   0x8   :  { %25 = vsyncpa [#allocation3], 0 }
   0x9   :  { %27 = vsyncpa [#allocation3 + $0x1], 0  ;;  %s2215_s1 = smov 0   ;;  %s2217_s22 = smov 0  }
   0xa   :  { %s2219_s23 = smov 0   ;;  %s2221_s24 = smov 0  }
   0xb LB: > { %2815 = sst [smem:[#allocation5_spill]] %s2094_s1  ;;  %s2236_s2 = sadd.s32 4294967295, %s2106_s24   ;;  %s2106_s24 = sphi %s2221_s24, %s2839_s24   ;;  %s2102_s23 = sphi %s2219_s23, %s2842_s23   ;;  %s2098_s22 = sphi %s2217_s22, %s2841_s22   ;;  %s2094_s1 = sphi %s2215_s1, %s2840_s1  }
   0xc   : > { %2816 = sst [smem:[#allocation6_spill]] %s2098_s22  ;;  %s1843_s25 = sadd.s32 4294967294, %s2106_s24  }
   0xd   : > { %2817 = sst [smem:[#allocation7_spill]] %s2102_s23  ;;  %s2240_s3 = sadd.s32 1, %s2106_s24  }
   0xe   : > { %2818 = sst [smem:[#allocation8_spill]] %s2106_s24  ;;  %s470_s26 = sadd.s32 1, %s2102_s23 }
   0xf   : > { %2819 = sst [smem:[#allocation9_spill]] %s2236_s2  ;;  %s467_s27 = ssub.s32 %s2106_s24, %s2240_s3 }
  0x10   : > { %2820 = sst [smem:[#allocation10_spill]] %s2240_s3  ;;  %p480_p0 = scmp.ne.s32.totalorder %s2102_s23, %s2098_s22 }
  0x11   : > { %p468_p1 = scmp.eq.s32.totalorder %s467_s27, 0  ;;  %p481_p2 = scmp.eq.s32.totalorder %s2236_s2, 1 }
  0x12   : > { %p486_p3 = scmp.ne.s32.totalorder %s2098_s22, %s2094_s1  ;;  %p487_p4 = scmp.eq.s32.totalorder %s1843_s25, 1 }
  0x13   : > { %s2251_s28 = scalar_select %p468_p1, %s2102_s23, %s470_s26  }
  0x14   : > { %p2253_p5 = por %p481_p2, %p480_p0  ;;  %p2257_p6 = por %p487_p4, %p486_p3 }
  0x15   : > { %2821 = sst [smem:[#allocation11_spill]] %s2251_s28  ;;  %p1846_p7 = scmp.ge.s32.totalorder %s2106_s24, 1 }
  0x16   : > { %s2822_s4 = scalar_select %p2253_p5, 1, 0 }
  0x17   : > { %s2824_s29 = scalar_select %p2257_p6, 1, 0 }
  0x18   : > { %2823 = sst [smem:[#allocation12_spill]] %s2822_s4  ;;  %p573_p8 = scmp.lt.s32.totalorder %s2106_s24, 3 }
  0x19   : > { %2825 = sst [smem:[#allocation13_spill]] %s2824_s29 }
  0x1a   : > { %p574_p9 = pnand %p1846_p7, %p573_p8 }
  0x1b   : > { %p633_p10 = scmp.lt.s32.totalorder (!%p574_p9), %s2236_s2, 1  ;;  %s2826_s21 = sld [smem:[#allocation17_spill]] (!%p574_p9) }
  0x1c   : > { %577 = sbr.rel (%p574_p9) target bundleno = 3923 (0xf53), region = 100  ;;  %s2827_s4 = sld [smem:[#allocation14_spill]] (!%p574_p9) }
  0x1d   : > { %s2828_s23 = sld [smem:[#allocation15_spill]] (!%p574_p9) }
  0x1e   : > { %s2829_s24 = sld [smem:[#allocation16_spill]] (!%p574_p9) }
  0x1f   : > { %s2830_s22 = sld [smem:[#allocation18_spill]] (!%p574_p9) }
  0x20   : > { %s2832_s19 = sld [smem:[#allocation9_spill]] (!%p574_p9) }
  0x21   : > { %v662_v0 = vld [vmem:[%s2826_s21 + $0x60] sm:$0xf]  ;;  %vm668_vm0 = vcmask 1043456   ;;  %v661_v1 = vld [vmem:[%s2826_s21 + $0x58] sm:$0xff]  ;;  %v2108_v2 = vmov 0   ;;  %s634_s27 = scalar_select %p633_p10, %s2236_s2, 1  ;;  %v642_v15 = vlaneseq }
  0x22   : > { %1981 = vset.pattern.permute.xlu0 %v2108_v2  ;;  %1850 = vmatpush.msk.msra.mxu0 %vm668_vm0, %v662_v0  ;;  %v660_v3 = vld [vmem:[%s2826_s21 + $0x50] sm:$0xff]  ;;  %v659_v4 = vld [vmem:[%s2826_s21 + $0x48] sm:$0xff]  ;;  %v658_v5 = vld [vmem:[%s2826_s21 + $0x40] sm:$0xff]  ;;  %vm664_vm1 = vcmask 818176   ;;  %v2109_v18 = vmov 0.0   ;;  %vm694_vm3 = vcmask 261120  }
  0x23   : > { %s1847_s3 = sshll.u32 %s634_s27, 3  ;;  %s1848_s29 = sshll.u32 %s634_s27, 1  ;;  %v657_v7 = vld [vmem:[%s2826_s21 + $0x38] sm:$0xff]  ;;  %v656_v8 = vld [vmem:[%s2826_s21 + $0x30] sm:$0xff]  ;;  %v655_v9 = vld [vmem:[%s2826_s21 + $0x28] sm:$0xff]  ;;  %v643_v16 = vand.u32 127, %v642_v15 }
  0x24   : > { %676 = vmatpush.msra.mxu0 %v661_v1  ;;  %s636_s20 = scalar_lea.vmem %s2827_s4, %s1847_s3  ;;  %s2286_s28 = scalar_lea.vmem %s2828_s23, %s1848_s29  ;;  %v654_v10 = vld [vmem:[%s2826_s21 + $0x20] sm:$0xff]  ;;  %v653_v11 = vld [vmem:[%s2826_s21 + $0x18] sm:$0xff]  ;;  %v652_v12 = vld [vmem:[%s2826_s21 + $0x10] sm:$0xff]  ;;  %vm898_vm7 = vcmask 130048   ;;  %vm961_vm8 = vcmask 64512   ;;  %vm1171_vm12 = vcmask 523264  }
  0x25   : > { %v641_v6 = vld [vmem:[%s636_s20] sm:$0xff]  ;;  %v651_v13 = vld [vmem:[%s2826_s21 + $0x8] sm:$0xff]  ;;  %v730_v29 = vld [vmem:[%s2781_s6 + $0x18] sm:$0xff]  ;;  %s2831_s3 = sld [smem:[#allocation6_spill]] }
  0x26   : > { %677 = vmatpush.msra.mxu0 %v660_v3  ;;  %645 = vperm.xlu0 %1981, %v641_v6   ;;  %v650_v14 = vld [vmem:[%s2826_s21] sm:$0xff]  ;;  %v734_v30 = vld [vmem:[%s2781_s6 + $0x38] sm:$0xff]  ;;  %v729_v32 = vld [vmem:[%s2781_s6 + $0x10] sm:$0xff]  ;;  %s2833_s0 = sld [smem:[#allocation19_spill]] }
  0x27   : > { %v663_v20 = vld [vmem:[%s2829_s24] sm:$0xff]  ;;  %v738_v31 = vld [vmem:[%s2781_s6 + $0x58] sm:$0xff]  ;;  %790 = vmatpush.msra.mxu1 %v730_v29  ;;  %810 = vmatpush.msra.mxu2 %v734_v30  ;;  %v733_v33 = vld [vmem:[%s2781_s6 + $0x30] sm:$0xff]  ;;  %s2834_s27 = sld [smem:[#allocation20_spill]] }
  0x28   : > { %678 = vmatpush.msra.mxu0 %v659_v4  ;;  %830 = vmatpush.msra.mxu3 %v738_v31  ;;  %v737_v34 = vld [vmem:[%s2781_s6 + $0x50] sm:$0xff]  ;;  %v728_v35 = vld [vmem:[%s2781_s6 + $0x8] sm:$0xff]  ;;  %v727_v38 = vld [vmem:[%s2781_s6] sm:$0xff] }
  0x29   : > { %791 = vmatpush.msra.mxu1 %v729_v32  ;;  %811 = vmatpush.msra.mxu2 %v733_v33  ;;  %v732_v36 = vld [vmem:[%s2781_s6 + $0x28] sm:$0xff]  ;;  %v731_v39 = vld [vmem:[%s2781_s6 + $0x20] sm:$0xff]  ;;  %v742_v41 = vld [vmem:[%s2781_s6 + $0x78] sm:$0xff] }
  0x2a   : > { %679 = vmatpush.msra.mxu0 %v658_v5  ;;  %831 = vmatpush.msra.mxu3 %v737_v34  ;;  %v736_v37 = vld [vmem:[%s2781_s6 + $0x48] sm:$0xff]  ;;  %v735_v40 = vld [vmem:[%s2781_s6 + $0x40] sm:$0xff]  ;;  %v746_v42 = vld [vmem:[%s2781_s6 + $0x98] sm:$0xff] }
  0x2b   : > { %792 = vmatpush.msra.mxu1 %v728_v35  ;;  %812 = vmatpush.msra.mxu2 %v732_v36  ;;  %v750_v43 = vld [vmem:[%s2781_s6 + $0xb8] sm:$0xff]  ;;  %v741_v44 = vld [vmem:[%s2781_s6 + $0x70] sm:$0xff]  ;;  %v740_v48 = vld [vmem:[%s2781_s6 + $0x68] sm:$0xff]  ;;  %s631_s25 = sand.u32 1, %s2831_s3  }
  0x2c   : > { %680 = vmatpush.msra.mxu0 %v657_v7  ;;  %832 = vmatpush.msra.mxu3 %v736_v37  ;;  %v745_v45 = vld [vmem:[%s2781_s6 + $0x90] sm:$0xff]  ;;  %v744_v49 = vld [vmem:[%s2781_s6 + $0x88] sm:$0xff]  ;;  %v739_v52 = vld [vmem:[%s2781_s6 + $0x60] sm:$0xff]  ;;  %s632_s30 = scalar_lea.vmem [#allocation2], %s631_s25 }
  0x2d   : > { %793 = vmatpush.msra.mxu1 %v727_v38  ;;  %813 = vmatpush.msra.mxu2 %v731_v39  ;;  %v749_v46 = vld [vmem:[%s2781_s6 + $0xb0] sm:$0xff]  ;;  %v748_v51 = vld [vmem:[%s2781_s6 + $0xa8] sm:$0xff]  ;;  %v743_v53 = vld [vmem:[%s2781_s6 + $0x80] sm:$0xff]  ;;  %s1772_s24 = scalar_lea.hbm %s2834_s27, %s2832_s19  ;;  %s1774_s2 = sshll.u32 %s632_s30, 4  ;;  %s1775_s2 = int_to_ptr.vmem [resolvable:$true] %s1774_s2 }
  0x2e   : > { %681 = vmatpush.msra.mxu0 %v656_v8  ;;  %833 = vmatpush.msra.mxu3 %v735_v40  ;;  %v747_v55 = vld [vmem:[%s2781_s6 + $0xa0] sm:$0xff]  ;;  %s1776_s20 = sshll.u32 %s1772_s24, 4  ;;  %s2064_s19 = scalar_lea.hbm %s2834_s27, 2  ;;  %s1777_s20 = int_to_ptr.hbm [resolvable:$true] %s1776_s20 }
  0x2f   : > { %850 = vmatpush.msrb.mxu1 %v742_v41  ;;  %870 = vmatpush.msrb.mxu2 %v746_v42  ;;  %v1982_v62 = vld [vmem:[%s2830_s22] ss:$0 sm:$0xff]  ;;  %v1986_v5 = vld [vmem:[%s2782_s7 + $0x2] ss:$0 sm:$0xff]  ;;  %v1987_v6 = vld [vmem:[%s2782_s7 + $0x3] ss:$0 sm:$0xff] }
  0x30   : > { %682 = vmatpush.msra.mxu0 %v655_v9  ;;  %890 = vmatpush.msrb.mxu3 %v750_v43  ;;  %v1983_v0 = vld [vmem:[%s2780_s5] ss:$0 sm:$0xff]  ;;  %v1988_v15 = vld [vmem:[%s2782_s7 + $0x4] ss:$0 sm:$0xff]  ;;  %v1031_v42 = vld [vmem:[%s2783_s8 + $0x8] sm:$0xff]  ;;  %s2058_s22 = sshra.s32 %s1777_s20, 4  ;;  %s2059_s22 = int_to_ptr.hbm [resolvable:$true] %s2058_s22 }
  0x31   : > { %851 = vmatpush.msrb.mxu1 %v741_v44  ;;  %871 = vmatpush.msrb.mxu2 %v745_v45  ;;  %v1984_v8 = vld [vmem:[%s2782_s7] ss:$0 sm:$0xff]  ;;  %s2060_s3 = scalar_lea.hbm %s2059_s22, 1  ;;  %p2065_p0 = scmp.lt.s32.totalorder %s2059_s22, %s2834_s27 }
  0x32   : > { %683 = vmatpush.msra.mxu0 %v654_v10  ;;  %891 = vmatpush.msrb.mxu3 %v749_v46  ;;  %v1985_v10 = vld [vmem:[%s2782_s7 + $0x1] ss:$0 sm:$0xff]  ;;  %p2061_p11 = scmp.ne.s32.totalorder %s2059_s22, %s2060_s3  ;;  %p2066_p1 = scmp.lt.s32.totalorder %s2064_s19, %s2060_s3 }
  0x33   : > { %852 = vmatpush.msrb.mxu1 %v740_v48  ;;  %872 = vmatpush.msrb.mxu2 %v744_v49  ;;  %v1030_v49 = vld [vmem:[%s2783_s8] sm:$0xff] }
  0x34   : > { %684 = vmatpush.msra.mxu0 %v653_v11  ;;  %892 = vmatpush.msrb.mxu3 %v748_v51  ;;  %v1032_v51 = vld [vmem:[%s2783_s8 + $0x10] sm:$0xff]  ;;  %p2062_p12 = pnand %p2061_p11, %p2253_p5  ;;  %p2067_p2 = por %p2066_p1, %p2065_p0 }
  0x35   : > { %853 = vmatpush.msrb.mxu1 %v739_v52  ;;  %873 = vmatpush.msrb.mxu2 %v743_v53 }
  0x36   : > { %685 = vmatpush.msra.mxu0 %v652_v12  ;;  %893 = vmatpush.msrb.mxu3 %v747_v55  ;;  %p2063_p13 = pneg %p2062_p12 }
  0x38   : > { %686 = vmatpush.msra.mxu0 %v651_v13  ;;  %p2068_p3 = pnand %p2067_p2, %p2063_p13 }
  0x3a   : > { %687 = vmatpush.msra.mxu0 %v650_v14 }
  0x98   : > { %v646_v17 = vpop.permute.xlu0 %645 }
  0x99   : > { %vm647_vm2 = vcmp.eq.s32.totalorder %v643_v16, %v646_v17  ;;  %v1989_v17 = vld [vmem:[%s2782_s7 + $0x5] ss:$0 sm:$0xff] }
  0x9a   : > { %v1849_v19 = vsel %vm647_vm2, 1.0, %v2109_v18 }
  0x9b   : > { %1851 = vmatmul.msk.f32.vlgmr.msra.gmra.mxu0 %vm664_vm1, %v1849_v19 }
 0x118   : > { %v689_v21 = vpop.f32.mrf.mxu0 }
 0x119   : > { %v690_v22 = vadd.f32 %v689_v21, %v663_v20 }
 0x11b   : > { %v695_v23 = vsel %vm694_vm3, %v690_v22, 0.0 }
 0x11c   : > { %696 = vadd.xlane.f32.xlu0 %v695_v23 }
 0x18f   : > { %v697_v24 = vpop.xlane.xlu0 %696 }
 0x190   : > { %v698_v25 = vmul.f32 0.03125, %v697_v24 }
 0x192   : > { %v2316_v26 = vsub.f32 %v690_v22, %v698_v25  ;;  %v2437_v22 = vld [vmem:[%s2286_s28] ss:$0 sm:$0xff] }
 0x194   : > { %v700_v27 = vmul.f32 %v2316_v26, %v2316_v26 }
 0x196   : > { %v701_v28 = vsel %vm694_vm3, %v700_v27, 0.0  ;;  %v2442_v27 = vld [vmem:[%s2286_s28 + $0x1] ss:$0 sm:$0xff]  ;;  %s1764_s28 = scalar_lea.sflag [#allocation3], %s631_s25 }
 0x197   : > { %702 = vadd.xlane.f32.xlu1 %v701_v28 }
 0x20a   : > { %v703_v47 = vpop.xlane.xlu1 %702 }
 0x20b   : > { %v704_v50 = vmul.f32 0.03125, %v703_v47 }
 0x20d   : > { %v705_v54 = vadd.f32 1e-12, %v704_v50  ;;  %v1033_v50 = vld [vmem:[%s2783_s8 + $0x18] sm:$0xff] }
 0x20f   : > { %2012 = vrsqrt.f32 %v705_v54  ;;  %vm712_vm5 = vweird.f32 %v705_v54 }
 0x215   : > { %v2013_v56 = vpop.eup %2012 }
 0x216   : > { %v707_v57 = vmul.f32 %v2013_v56, %v705_v54  ;;  %vm713_vm4 = vweird.f32 %v2013_v56  ;;  %v1992_v54 = vld [vmem:[%s2784_s9] ss:$0 sm:$0xff] }
 0x217   : > { %vm714_vm6 = vmor %vm712_vm5, %vm713_vm4 }
 0x218   : > { %v708_v58 = vmul.f32 %v2013_v56, %v707_v57 }
 0x21a   : > { %v709_v59 = vmul.f32 0.5, %v708_v58 }
 0x21c   : > { %v710_v60 = vsub.f32 1.5, %v709_v59 }
 0x21e   : > { %v711_v61 = vmul.f32 %v2013_v56, %v710_v60 }
 0x220   : > { %v715_v63 = vsel %vm714_vm6, %v2013_v56, %v711_v61 }
 0x221   : > { %v716_v1 = vmul.f32 %v715_v63, %v2316_v26 }
 0x223   : > { %v720_v2 = vmul.f32 %v1982_v62, %v716_v1 }
 0x225   : > { %v2400_v3 = vadd.f32 %v1983_v0, %v720_v2  ;;  %v1122_v2 = vld [vmem:[%s2787_s12 + $0x18] sm:$0xff] }
 0x227   : > { %1852 = vmatmul.msk.f32.vlgmr.msra.gmra.mxu1 %vm694_vm3, %v2400_v3  ;;  %1853 = vmatmul.msk.f32.vlgmr.msra.gmra.mxu2 %vm694_vm3, %v2400_v3 }
 0x228   : > { %1854 = vmatmul.msk.f32.vlgmr.msra.gmra.mxu3 %vm694_vm3, %v2400_v3 }
 0x22f   : > { %1855 = vmatmul.msk.f32.vlgmr.msrb.gmra.mxu1 %vm694_vm3, %v2400_v3  ;;  %1856 = vmatmul.msk.f32.vlgmr.msrb.gmra.mxu2 %vm694_vm3, %v2400_v3 }
 0x230   : > { %1857 = vmatmul.msk.f32.vlgmr.msrb.gmra.mxu3 %vm694_vm3, %v2400_v3 }
 0x2a4   : > { %v795_v4 = vpop.f32.mrf.mxu1 }
 0x2a5   : > { %v796_v14 = vadd.f32 %v1984_v8, %v795_v4  ;;  %v1121_v4 = vld [vmem:[%s2787_s12 + $0x10] sm:$0xff] }
 0x2aa   : > { %v815_v7 = vpop.f32.mrf.mxu2 }
 0x2ab   : > { %v835_v9 = vpop.f32.mrf.mxu3  ;;  %v816_v16 = vadd.f32 %v1985_v10, %v815_v7 }
 0x2ac   : > { %v836_v11 = vadd.f32 %v1986_v5, %v835_v9  ;;  %v855_v12 = vpop.f32.mrf.mxu1  ;;  %v1119_v5 = vld [vmem:[%s2787_s12] sm:$0xff] }
 0x2ad   : > { %v856_v13 = vadd.f32 %v1987_v6, %v855_v12 }
 0x2ae   : > { %1858 = vmatpush.xpose.msk.msra.mxu1 %vm898_vm7, %v836_v11 }
 0x2af   : > { %1860 = vmatpush.xpose.msk.msra.mxu2 %vm898_vm7, %v856_v13 }
 0x2b1   : > { %1859 = vmatmul.msk.f32.vlgmr.msra.gmra.mxu1 %vm898_vm7, %v796_v14 }
 0x2b2   : > { %v875_v18 = vpop.f32.mrf.mxu2  ;;  %1861 = vmatmul.msk.f32.vlgmr.msra.gmra.mxu2 %vm898_vm7, %v816_v16 }
 0x2b3   : > { %v876_v19 = vadd.f32 %v1988_v15, %v875_v18  ;;  %v895_v20 = vpop.f32.mrf.mxu3  ;;  %1051 = vmatpush.msrb.mxu2 %v1031_v42  ;;  %v1993_v15 = vld [vmem:[%s2785_s10] ss:$0 sm:$0xff] }
 0x2b4   : > { %v896_v21 = vadd.f32 %v1989_v17, %v895_v20  ;;  %v1994_v18 = vld [vmem:[%s2786_s11] ss:$0 sm:$0xff] }
 0x2b5   : > { %1002 = vmatpush.msra.mxu3 %v876_v19  ;;  %1052 = vmatpush.msrb.mxu2 %v1030_v49 }
 0x2b6   : > { %1025 = vmatpush.msrb.mxu1 %v896_v21  ;;  %v1166_v21 = vld [vmem:[%s2789_s14 + $0x38] sm:$0xff] }
 0x2b7   : > { %1074 = vmatpush.msrb.mxu3 %v1033_v50  ;;  %1142 = vmatpush.msra.mxu2 %v1122_v2  ;;  %v1887_v2 = vld [vmem:[%s2781_s6 + $0x158] sm:$0xff] }
 0x2b8   : > { %1183 = vmatpush.msra.mxu1 %v1166_v21 }
 0x2b9   : > { %1075 = vmatpush.msrb.mxu3 %v1032_v51  ;;  %1143 = vmatpush.msra.mxu2 %v1121_v4  ;;  %v1891_v4 = vld [vmem:[%s2781_s6 + $0x178] sm:$0xff] }
 0x32e   : > { %v922_v23 = vpop.f32.mrf.mxu1 }
 0x32f   : > { %v951_v24 = vmul.f32 0.25, %v922_v23  ;;  %v1165_v23 = vld [vmem:[%s2789_s14 + $0x30] sm:$0xff] }
 0x330   : > { %1184 = vmatpush.msra.mxu1 %v1165_v23  ;;  %v1997_v23 = vld [vmem:[%s2791_s16] ss:$0 sm:$0xff] }
 0x331   : > { %v959_v25 = vadd.f32 %v2437_v22, %v951_v24  ;;  %v1164_v24 = vld [vmem:[%s2789_s14 + $0x28] sm:$0xff] }
 0x332   : > { %1185 = vmatpush.msra.mxu1 %v1164_v24 }
 0x333   : > { %v962_v26 = vsel %vm961_vm8, %v959_v25, -inf }
 0x334   : > { %963 = vmax.xlane.f32.xlu1 %v962_v26  ;;  %v1162_v26 = vld [vmem:[%s2789_s14 + $0x18] sm:$0xff] }
 0x335   : > { %v948_v28 = vpop.f32.mrf.mxu2 }
 0x336   : > { %v952_v29 = vmul.f32 0.25, %v948_v28  ;;  %v1161_v28 = vld [vmem:[%s2789_s14 + $0x10] sm:$0xff] }
 0x338   : > { %v960_v30 = vadd.f32 %v2442_v27, %v952_v29  ;;  %v1160_v29 = vld [vmem:[%s2789_s14 + $0x8] sm:$0xff] }
 0x33a   : > { %v965_v31 = vsel %vm961_vm8, %v960_v30, -inf }
 0x33b   : > { %966 = vmax.xlane.f32.xlu2 %v965_v31  ;;  %v1995_v31 = vld [vmem:[%s2788_s13] ss:$0 sm:$0xff] }
 0x3a7   : > { %v964_v32 = vpop.xlane.xlu1 %963 }
 0x3a8   : > { %v968_v33 = vsub.f32 %v959_v25, %v964_v32  ;;  %v1163_v25 = vld [vmem:[%s2789_s14 + $0x20] sm:$0xff] }
 0x3a9   : > { %1186 = vmatpush.msra.mxu1 %v1163_v25  ;;  %v1998_v25 = vld [vmem:[%s2792_s17] ss:$0 sm:$0xff] }
 0x3aa   : > { %v970_v34 = vmul.f32 1.442695, %v968_v33 }
 0x3ab   : > { %1187 = vmatpush.msra.mxu1 %v1162_v26 }
 0x3ac   : > { %2014 = vpow2.f32 %v970_v34 }
 0x3ad   : > { %1188 = vmatpush.msra.mxu1 %v1161_v28 }
 0x3ae   : > { %v967_v35 = vpop.xlane.xlu2 %966 }
 0x3af   : > { %v969_v36 = vsub.f32 %v960_v30, %v967_v35  ;;  %v1159_v30 = vld [vmem:[%s2789_s14] sm:$0xff]  ;;  %1189 = vmatpush.msra.mxu1 %v1160_v29 }
 0x3b1   : > { %v972_v37 = vmul.f32 1.442695, %v969_v36  ;;  %1190 = vmatpush.msra.mxu1 %v1159_v30  ;;  %v1999_v30 = vld [vmem:[%s2782_s7 + $0x8] ss:$0 sm:$0xff] }
 0x3b2   : > { %v2015_v38 = vpop.eup %2014 }
 0x3b3   : > { %2016 = vpow2.f32 %v972_v37  ;;  %v974_v39 = vsel %vm961_vm8, %v2015_v38, 0.0 }
 0x3b4   : > { %975 = vadd.xlane.f32.xlu2 %v974_v39 }
 0x3b9   : > { %v2017_v40 = vpop.eup %2016 }
 0x3ba   : > { %v977_v41 = vsel %vm961_vm8, %v2017_v40, 0.0 }
 0x3bb   : > { %978 = vadd.xlane.f32.xlu1 %v977_v41 }
 0x427   : > { %v976_v43 = vpop.xlane.xlu2 %975 }
 0x428   : > { %2018 = vrcp.f32 %v976_v43  ;;  %v1996_v43 = vld [vmem:[%s2790_s15] ss:$0 sm:$0xff] }
 0x42e   : > { %v2019_v44 = vpop.eup %2018  ;;  %v979_v45 = vpop.xlane.xlu1 %978 }
 0x42f   : > { %v982_v46 = vmul.f32 %v2019_v44, %v2015_v38  ;;  %2020 = vrcp.f32 %v979_v45 }
 0x431   : > { %1862 = vmatmul.msk.f32.vlgmr.msra.gmra.mxu3 %vm961_vm8, %v982_v46 }
 0x435   : > { %v2021_v47 = vpop.eup %2020 }
 0x436   : > { %v983_v48 = vmul.f32 %v2021_v47, %v2017_v40 }
 0x438   : > { %1863 = vmatmul.msk.f32.vlgmr.msrb.gmra.mxu1 %vm961_vm8, %v983_v48 }
 0x4b4   : > { %v1004_v52 = vpop.f32.mrf.mxu3 }
 0x4b5   : > { %1864 = vmatmul.msk.f32.vlgmr.msrb.gmra.mxu2 %vm898_vm7, %v1004_v52  ;;  %v1027_v53 = vpop.f32.mrf.mxu1 }
 0x4b6   : > { %1865 = vmatmul.msk.f32.vlgmr.msrb.gmra.mxu3 %vm898_vm7, %v1027_v53  ;;  %v1871_v53 = vld [vmem:[%s2781_s6 + $0xd8] sm:$0xff] }
 0x538   : > { %v1054_v55 = vpop.f32.mrf.mxu2 }
 0x539   : > { %v1077_v56 = vpop.f32.mrf.mxu3 }
 0x53a   : > { %v1080_v57 = vadd.f32 %v1077_v56, %v1054_v55  ;;  %v1879_v55 = vld [vmem:[%s2781_s6 + $0x118] sm:$0xff]  ;;  %v1870_v56 = vld [vmem:[%s2781_s6 + $0xd0] sm:$0xff] }
 0x53b   : > { %1333 = vmatpush.msrb.mxu0 %v1879_v55 }
 0x53c   : > { %v1085_v58 = vadd.f32 %v1992_v54, %v1080_v57  ;;  %v1875_v54 = vld [vmem:[%s2781_s6 + $0xf8] sm:$0xff]  ;;  %v1874_v57 = vld [vmem:[%s2781_s6 + $0xf0] sm:$0xff] }
 0x53d   : > { %1313 = vmatpush.msra.mxu3 %v1875_v54 }
 0x53e   : > { %v1086_v59 = vadd.f32 %v1085_v58, %v2400_v3  ;;  %v1120_v3 = vld [vmem:[%s2787_s12 + $0x8] sm:$0xff]  ;;  %v1878_v58 = vld [vmem:[%s2781_s6 + $0x110] sm:$0xff] }
 0x53f   : > { %1144 = vmatpush.msra.mxu2 %v1120_v3  ;;  %1314 = vmatpush.msra.mxu3 %v1874_v57  ;;  %v1882_v3 = vld [vmem:[%s2781_s6 + $0x130] sm:$0xff] }
 0x540   : > { %v1089_v60 = vsel %vm694_vm3, %v1086_v59, 0.0  ;;  %1334 = vmatpush.msrb.mxu0 %v1878_v58 }
 0x541   : > { %1090 = vadd.xlane.f32.xlu2 %v1089_v60  ;;  %1145 = vmatpush.msra.mxu2 %v1119_v5  ;;  %v1873_v60 = vld [vmem:[%s2781_s6 + $0xe8] sm:$0xff]  ;;  %v1886_v5 = vld [vmem:[%s2781_s6 + $0x150] sm:$0xff] }
 0x542   : > { %1315 = vmatpush.msra.mxu3 %v1873_v60 }
 0x543   : > { %1293 = vmatpush.msrb.mxu2 %v1871_v53 }
 0x545   : > { %1294 = vmatpush.msrb.mxu2 %v1870_v56 }
 0x5b4   : > { %v1091_v61 = vpop.xlane.xlu2 %1090 }
 0x5b5   : > { %v1092_v62 = vmul.f32 0.03125, %v1091_v61  ;;  %v1877_v61 = vld [vmem:[%s2781_s6 + $0x108] sm:$0xff] }
 0x5b6   : > { %1335 = vmatpush.msrb.mxu0 %v1877_v61 }
 0x5b7   : > { %v1093_v63 = vsub.f32 %v1086_v59, %v1092_v62  ;;  %v1869_v59 = vld [vmem:[%s2781_s6 + $0xc8] sm:$0xff]  ;;  %v1868_v62 = vld [vmem:[%s2781_s6 + $0xc0] sm:$0xff] }
 0x5b8   : > { %1295 = vmatpush.msrb.mxu2 %v1869_v59 }
 0x5b9   : > { %v1094_v0 = vmul.f32 %v1093_v63, %v1093_v63 }
 0x5ba   : > { %1296 = vmatpush.msrb.mxu2 %v1868_v62 }
 0x5bb   : > { %v1095_v1 = vsel %vm694_vm3, %v1094_v0, 0.0  ;;  %v1876_v0 = vld [vmem:[%s2781_s6 + $0x100] sm:$0xff] }
 0x5bc   : > { %1096 = vadd.xlane.f32.xlu1 %v1095_v1  ;;  %1336 = vmatpush.msrb.mxu0 %v1876_v0  ;;  %v1883_v1 = vld [vmem:[%s2781_s6 + $0x138] sm:$0xff] }
 0x5be   : > { %1393 = vmatpush.msra.mxu0 %v1891_v4 }
 0x62f   : > { %v1097_v6 = vpop.xlane.xlu1 %1096 }
 0x630   : > { %v1098_v7 = vmul.f32 0.03125, %v1097_v6  ;;  %v1890_v6 = vld [vmem:[%s2781_s6 + $0x170] sm:$0xff] }
 0x631   : > { %1394 = vmatpush.msra.mxu0 %v1890_v6 }
 0x632   : > { %v1099_v8 = vadd.f32 1e-12, %v1098_v7 }
 0x634   : > { %2022 = vrsqrt.f32 %v1099_v8  ;;  %vm1106_vm10 = vweird.f32 %v1099_v8 }
 0x63a   : > { %v2023_v9 = vpop.eup %2022 }
 0x63b   : > { %v1101_v10 = vmul.f32 %v2023_v9, %v1099_v8  ;;  %vm1107_vm9 = vweird.f32 %v2023_v9  ;;  %v1881_v8 = vld [vmem:[%s2781_s6 + $0x128] sm:$0xff] }
 0x63c   : > { %vm1108_vm11 = vmor %vm1106_vm10, %vm1107_vm9 }
 0x63d   : > { %v1102_v11 = vmul.f32 %v2023_v9, %v1101_v10 }
 0x63f   : > { %v1103_v12 = vmul.f32 0.5, %v1102_v11  ;;  %v1889_v11 = vld [vmem:[%s2781_s6 + $0x168] sm:$0xff] }
 0x640   : > { %1395 = vmatpush.msra.mxu0 %v1889_v11 }
 0x641   : > { %v1104_v13 = vsub.f32 1.5, %v1103_v12  ;;  %v1880_v12 = vld [vmem:[%s2781_s6 + $0x120] sm:$0xff] }
 0x643   : > { %v1105_v14 = vmul.f32 %v2023_v9, %v1104_v13  ;;  %v1884_v13 = vld [vmem:[%s2781_s6 + $0x140] sm:$0xff] }
 0x645   : > { %v1109_v16 = vsel %vm1108_vm11, %v2023_v9, %v1105_v14  ;;  %v1885_v9 = vld [vmem:[%s2781_s6 + $0x148] sm:$0xff] }
 0x646   : > { %v1110_v17 = vmul.f32 %v1109_v16, %v1093_v63  ;;  %v1872_v63 = vld [vmem:[%s2781_s6 + $0xe0] sm:$0xff] }
 0x647   : > { %1316 = vmatpush.msra.mxu3 %v1872_v63 }
 0x648   : > { %v1114_v19 = vmul.f32 %v1993_v15, %v1110_v17  ;;  %v1888_v15 = vld [vmem:[%s2781_s6 + $0x160] sm:$0xff] }
 0x649   : > { %1373 = vmatpush.msrb.mxu3 %v1887_v2  ;;  %1396 = vmatpush.msra.mxu0 %v1888_v15 }
 0x64a   : > { %v1118_v20 = vadd.f32 %v1994_v18, %v1114_v19 }
 0x64b   : > { %1374 = vmatpush.msrb.mxu3 %v1886_v5 }
 0x64c   : > { %1866 = vmatmul.msk.f32.vlgmr.msra.gmra.mxu2 %vm694_vm3, %v1118_v20 }
 0x64d   : > { %1353 = vmatpush.msra.mxu2 %v1883_v1  ;;  %1375 = vmatpush.msrb.mxu3 %v1885_v9  ;;  %v1912_v9 = vld [vmem:[%s2783_s8 + $0x30] sm:$0xff] }
 0x64f   : > { %1354 = vmatpush.msra.mxu2 %v1882_v3  ;;  %1376 = vmatpush.msrb.mxu3 %v1884_v13 }
 0x651   : > { %1355 = vmatpush.msra.mxu2 %v1881_v8  ;;  %v1913_v8 = vld [vmem:[%s2783_s8 + $0x38] sm:$0xff] }
 0x653   : > { %1356 = vmatpush.msra.mxu2 %v1880_v12  ;;  %v2005_v12 = vld [vmem:[%s2784_s9 + $0x1] ss:$0 sm:$0xff] }
 0x6cf   : > { %v1147_v32 = vpop.f32.mrf.mxu2 }
 0x6d0   : > { %v1148_v33 = vadd.f32 %v1995_v31, %v1147_v32 }
 0x6d2   : > { %v1151_v34 = vmul.f32 0.044715, %v1148_v33  ;;  %v1150_v40 = vmul.f32 0.5, %v1148_v33 }
 0x6d4   : > { %v1152_v35 = vmul.f32 %v1151_v34, %v1148_v33 }
 0x6d6   : > { %v1153_v36 = vmul.f32 %v1152_v35, %v1148_v33 }
 0x6d8   : > { %v1154_v37 = vadd.f32 %v1153_v36, %v1148_v33  ;;  %v2000_v33 = vld [vmem:[%s2782_s7 + $0x6] ss:$0 sm:$0xff]  ;;  %v2002_v36 = vld [vmem:[%s2782_s7 + $0xb] ss:$0 sm:$0xff] }
 0x6da   : > { %v1155_v38 = vmul.f32 0.7978846, %v1154_v37 }
 0x6dc   : > { %2024 = vtanh.f32 %v1155_v38 }
 0x6e2   : > { %v2025_v39 = vpop.eup %2024 }
 0x6e3   : > { %v1157_v41 = vadd.f32 1.0, %v2025_v39 }
 0x6e5   : > { %v1158_v42 = vmul.f32 %v1157_v41, %v1150_v40  ;;  %v2003_v40 = vld [vmem:[%s2782_s7 + $0x9] ss:$0 sm:$0xff]  ;;  %v2004_v41 = vld [vmem:[%s2782_s7 + $0xa] ss:$0 sm:$0xff] }
 0x6e7   : > { %1867 = vmatmul.msk.f32.vlgmr.msra.gmra.mxu1 %vm1171_vm12, %v1158_v42  ;;  %v2001_v42 = vld [vmem:[%s2782_s7 + $0x7] ss:$0 sm:$0xff] }
 0x764   : > { %v1192_v44 = vpop.f32.mrf.mxu1 }
 0x765   : > { %v1193_v45 = vadd.f32 %v1996_v43, %v1192_v44 }
 0x767   : > { %v1195_v46 = vadd.f32 %v1193_v45, %v1118_v20 }
 0x769   : > { %v1198_v47 = vsel %vm694_vm3, %v1195_v46, 0.0 }
 0x76a   : > { %1199 = vadd.xlane.f32.xlu2 %v1198_v47 }
 0x7dd   : > { %v1200_v48 = vpop.xlane.xlu2 %1199 }
 0x7de   : > { %v1201_v49 = vmul.f32 0.03125, %v1200_v48 }
 0x7e0   : > { %v2521_v50 = vsub.f32 %v1195_v46, %v1201_v49 }
 0x7e2   : > { %v1203_v51 = vmul.f32 %v2521_v50, %v2521_v50 }
 0x7e4   : > { %v1204_v52 = vsel %vm694_vm3, %v1203_v51, 0.0 }
 0x7e5   : > { %1205 = vadd.xlane.f32.xlu1 %v1204_v52 }
 0x858   : > { %v1206_v7 = vpop.xlane.xlu1 %1205 }
 0x859   : > { %v1207_v10 = vmul.f32 0.03125, %v1206_v7  ;;  %v1910_v7 = vld [vmem:[%s2783_s8 + $0x20] sm:$0xff] }
 0x85b   : > { %v1208_v14 = vadd.f32 1e-12, %v1207_v10 }
 0x85d   : > { %2026 = vrsqrt.f32 %v1208_v14  ;;  %vm1215_vm14 = vweird.f32 %v1208_v14 }
 0x863   : > { %v2027_v16 = vpop.eup %2026 }
 0x864   : > { %v1210_v17 = vmul.f32 %v2027_v16, %v1208_v14  ;;  %vm1216_vm13 = vweird.f32 %v2027_v16 }
 0x865   : > { %vm1217_vm15 = vmor %vm1215_vm14, %vm1216_vm13 }
 0x866   : > { %v1211_v18 = vmul.f32 %v2027_v16, %v1210_v17 }
 0x868   : > { %v1212_v19 = vmul.f32 0.5, %v1211_v18 }
 0x86a   : > { %v1213_v20 = vsub.f32 1.5, %v1212_v19 }
 0x86c   : > { %v1214_v21 = vmul.f32 %v2027_v16, %v1213_v20 }
 0x86e   : > { %v1218_v24 = vsel %vm1217_vm15, %v2027_v16, %v1214_v21 }
 0x86f   : > { %v1219_v26 = vmul.f32 %v1218_v24, %v2521_v50 }
 0x871   : > { %v1223_v28 = vmul.f32 %v1997_v23, %v1219_v26  ;;  %v1921_v26 = vld [vmem:[%s2787_s12 + $0x30] sm:$0xff] }
 0x873   : > { %v2605_v29 = vadd.f32 %v1998_v25, %v1223_v28  ;;  %v1922_v25 = vld [vmem:[%s2787_s12 + $0x38] sm:$0xff]  ;;  %v1920_v28 = vld [vmem:[%s2787_s12 + $0x28] sm:$0xff] }
 0x875   : > { %1898 = vmatmul.msk.f32.vlgmr.msrb.gmra.mxu2 %vm694_vm3, %v2605_v29  ;;  %1899 = vmatmul.msk.f32.vlgmr.msra.gmra.mxu3 %vm694_vm3, %v2605_v29 }
 0x876   : > { %1900 = vmatmul.msk.f32.vlgmr.msrb.gmra.mxu0 %vm694_vm3, %v2605_v29 }
 0x87d   : > { %1901 = vmatmul.msk.f32.vlgmr.msra.gmra.mxu2 %vm694_vm3, %v2605_v29  ;;  %1902 = vmatmul.msk.f32.vlgmr.msrb.gmra.mxu3 %vm694_vm3, %v2605_v29 }
 0x87e   : > { %1903 = vmatmul.msk.f32.vlgmr.msra.gmra.mxu0 %vm694_vm3, %v2605_v29 }
 0x8f3   : > { %v1338_v31 = vpop.f32.mrf.mxu0 }
 0x8f4   : > { %v1339_v32 = vadd.f32 %v1999_v30, %v1338_v31 }
 0x8f6   : > { %1904 = vmatpush.xpose.msk.msrb.mxu1 %vm898_vm7, %v1339_v32 }
 0x8f8   : > { %v1298_v34 = vpop.f32.mrf.mxu2  ;;  %v1318_v35 = vpop.f32.mrf.mxu3 }
 0x8f9   : > { %v1299_v37 = vadd.f32 %v2000_v33, %v1298_v34  ;;  %v1319_v47 = vadd.f32 %v2001_v42, %v1318_v35  ;;  %v2007_v42 = vld [vmem:[%s2786_s11 + $0x1] ss:$0 sm:$0xff] }
 0x8fb   : > { %v1398_v38 = vpop.f32.mrf.mxu0  ;;  %1905 = vmatmul.msk.f32.vlgmr.msrb.gmra.mxu1 %vm898_vm7, %v1299_v37 }
 0x8fc   : > { %v1399_v39 = vadd.f32 %v2002_v36, %v1398_v38 }
 0x8fe   : > { %1520 = vmatpush.msrb.mxu0 %v1399_v39  ;;  %v2006_v39 = vld [vmem:[%s2785_s10 + $0x1] ss:$0 sm:$0xff] }
 0x900   : > { %v1358_v43 = vpop.f32.mrf.mxu2  ;;  %v1378_v44 = vpop.f32.mrf.mxu3 }
 0x901   : > { %v1359_v45 = vadd.f32 %v2003_v40, %v1358_v43  ;;  %v1379_v46 = vadd.f32 %v2004_v41, %v1378_v44 }
 0x903   : > { %1906 = vmatpush.xpose.msk.msrb.mxu2 %vm898_vm7, %v1359_v45  ;;  %1497 = vmatpush.msra.mxu3 %v1379_v46  ;;  %v1932_v45 = vld [vmem:[%s2789_s14 + $0x78] sm:$0xff]  ;;  %v1931_v46 = vld [vmem:[%s2789_s14 + $0x70] sm:$0xff] }
 0x904   : > { %1685 = vmatpush.msra.mxu0 %v1932_v45 }
 0x905   : > { %1643 = vmatpush.msrb.mxu3 %v1922_v25 }
 0x906   : > { %1907 = vmatmul.msk.f32.vlgmr.msrb.gmra.mxu2 %vm898_vm7, %v1319_v47  ;;  %1686 = vmatpush.msra.mxu0 %v1931_v46  ;;  %v1930_v47 = vld [vmem:[%s2789_s14 + $0x68] sm:$0xff] }
 0x907   : > { %1570 = vmatpush.msra.mxu2 %v1913_v8  ;;  %1644 = vmatpush.msrb.mxu3 %v1921_v26  ;;  %v2011_v26 = vld [vmem:[%s2792_s17 + $0x1] ss:$0 sm:$0xff] }
 0x908   : > { %1687 = vmatpush.msra.mxu0 %v1930_v47 }
 0x909   : > { %1571 = vmatpush.msra.mxu2 %v1912_v9  ;;  %1645 = vmatpush.msrb.mxu3 %v1920_v28  ;;  %v1735_v9 = vld [vmem:[%s2793_s18 + $0x18] sm:$0xff] }
 0x978   : > { %v1424_v48 = vpop.f32.mrf.mxu1 }
 0x979   : > { %v1453_v49 = vmul.f32 0.25, %v1424_v48  ;;  %v1929_v48 = vld [vmem:[%s2789_s14 + $0x60] sm:$0xff] }
 0x97a   : > { %1688 = vmatpush.msra.mxu0 %v1929_v48 }
 0x97b   : > { %v1455_v50 = vadd.f32 %v2437_v22, %v1453_v49  ;;  %v1928_v49 = vld [vmem:[%s2789_s14 + $0x58] sm:$0xff] }
 0x97c   : > { %1689 = vmatpush.msra.mxu0 %v1928_v49 }
 0x97d   : > { %v1457_v51 = vsel %vm961_vm8, %v1455_v50, -inf }
 0x97e   : > { %1458 = vmax.xlane.f32.xlu2 %v1457_v51  ;;  %v1926_v51 = vld [vmem:[%s2789_s14 + $0x48] sm:$0xff] }
 0x989   : > { %v1450_v52 = vpop.f32.mrf.mxu2 }
 0x98a   : > { %v1454_v53 = vmul.f32 0.25, %v1450_v52  ;;  %v1925_v52 = vld [vmem:[%s2789_s14 + $0x40] sm:$0xff] }
 0x98c   : > { %v1456_v54 = vadd.f32 %v2442_v27, %v1454_v53  ;;  %v1911_v27 = vld [vmem:[%s2783_s8 + $0x28] sm:$0xff]  ;;  %v2008_v53 = vld [vmem:[%s2788_s13 + $0x1] ss:$0 sm:$0xff] }
 0x98d   : > { %1547 = vmatpush.msra.mxu1 %v1911_v27 }
 0x98e   : > { %v1460_v55 = vsel %vm961_vm8, %v1456_v54, -inf }
 0x98f   : > { %1461 = vmax.xlane.f32.xlu1 %v1460_v55  ;;  %1548 = vmatpush.msra.mxu1 %v1910_v7 }
 0x991   : > { %1752 = vmatpush.msrb.mxu1 %v1735_v9 }
 0x9f1   : > { %v1459_v56 = vpop.xlane.xlu2 %1458 }
 0x9f2   : > { %v1463_v57 = vsub.f32 %v1455_v50, %v1459_v56  ;;  %v1927_v50 = vld [vmem:[%s2789_s14 + $0x50] sm:$0xff] }
 0x9f3   : > { %1690 = vmatpush.msra.mxu0 %v1927_v50 }
 0x9f4   : > { %v1465_v58 = vmul.f32 1.442695, %v1463_v57 }
 0x9f5   : > { %1691 = vmatpush.msra.mxu0 %v1926_v51 }
 0x9f6   : > { %2028 = vpow2.f32 %v1465_v58 }
 0x9f7   : > { %1692 = vmatpush.msra.mxu0 %v1925_v52 }
 0x9fc   : > { %v2029_v59 = vpop.eup %2028 }
 0x9fd   : > { %v1469_v60 = vsel %vm961_vm8, %v2029_v59, 0.0 }
 0x9fe   : > { %1470 = vadd.xlane.f32.xlu2 %v1469_v60 }
 0xa02   : > { %v1462_v61 = vpop.xlane.xlu1 %1461 }
 0xa03   : > { %v1464_v22 = vsub.f32 %v1456_v54, %v1462_v61 }
 0xa05   : > { %v1467_v62 = vmul.f32 1.442695, %v1464_v22 }
 0xa07   : > { %2030 = vpow2.f32 %v1467_v62 }
 0xa0d   : > { %v2031_v63 = vpop.eup %2030 }
 0xa0e   : > { %v1472_v0 = vsel %vm961_vm8, %v2031_v63, 0.0 }
 0xa0f   : > { %1473 = vadd.xlane.f32.xlu1 %v1472_v0  ;;  %v2009_v0 = vld [vmem:[%s2790_s15 + $0x1] ss:$0 sm:$0xff] }
 0xa71   : > { %v1471_v1 = vpop.xlane.xlu2 %1470 }
 0xa72   : > { %2032 = vrcp.f32 %v1471_v1 }
 0xa78   : > { %v2033_v2 = vpop.eup %2032 }
 0xa79   : > { %v1477_v4 = vmul.f32 %v2033_v2, %v2029_v59 }
 0xa7b   : > { %1908 = vmatmul.msk.f32.vlgmr.msra.gmra.mxu3 %vm961_vm8, %v1477_v4 }
 0xa82   : > { %v1474_v3 = vpop.xlane.xlu1 %1473 }
 0xa83   : > { %2034 = vrcp.f32 %v1474_v3 }
 0xa89   : > { %v2035_v5 = vpop.eup %2034 }
 0xa8a   : > { %v1478_v6 = vmul.f32 %v2035_v5, %v2031_v63 }
 0xa8c   : > { %1909 = vmatmul.msk.f32.vlgmr.msrb.gmra.mxu0 %vm961_vm8, %v1478_v6 }
 0xafe   : > { %v1499_v10 = vpop.f32.mrf.mxu3 }
 0xaff   : > { %1914 = vmatmul.msk.f32.vlgmr.msra.gmra.mxu1 %vm898_vm7, %v1499_v10  ;;  %v1734_v10 = vld [vmem:[%s2793_s18 + $0x10] sm:$0xff] }
 0xb00   : > { %1753 = vmatpush.msrb.mxu1 %v1734_v10 }
 0xb09   : > { %v1522_v11 = vpop.f32.mrf.mxu0 }
 0xb0a   : > { %1915 = vmatmul.msk.f32.vlgmr.msra.gmra.mxu2 %vm898_vm7, %v1522_v11  ;;  %v1733_v11 = vld [vmem:[%s2793_s18 + $0x8] sm:$0xff]  ;;  %vm1761_vm7 = vcmask 253952  }
 0xb0b   : > { %1754 = vmatpush.msrb.mxu1 %v1733_v11 }
 0xb7c   : > { %v1550_v13 = vpop.f32.mrf.mxu1 }
 0xb8d   : > { %v1573_v14 = vpop.f32.mrf.mxu2 }
 0xb8e   : > { %v1576_v15 = vadd.f32 %v1573_v14, %v1550_v13 }
 0xb90   : > { %v1582_v16 = vadd.f32 %v2005_v12, %v1576_v15  ;;  %v1732_v12 = vld [vmem:[%s2793_s18] sm:$0xff] }
 0xb91   : > { %1755 = vmatpush.msrb.mxu1 %v1732_v12 }
 0xb92   : > { %v1583_v17 = vadd.f32 %v1582_v16, %v2605_v29  ;;  %v1919_v29 = vld [vmem:[%s2787_s12 + $0x20] sm:$0xff] }
 0xb93   : > { %1646 = vmatpush.msrb.mxu3 %v1919_v29 }
 0xb94   : > { %v1588_v18 = vsel %vm694_vm3, %v1583_v17, 0.0 }
 0xb95   : > { %1589 = vadd.xlane.f32.xlu2 %v1588_v18 }
 0xc08   : > { %v1590_v19 = vpop.xlane.xlu2 %1589 }
 0xc09   : > { %v1591_v20 = vmul.f32 0.03125, %v1590_v19 }
 0xc0b   : > { %v1592_v21 = vsub.f32 %v1583_v17, %v1591_v20 }
 0xc0d   : > { %v1593_v23 = vmul.f32 %v1592_v21, %v1592_v21 }
 0xc0f   : > { %v1594_v24 = vsel %vm694_vm3, %v1593_v23, 0.0  ;;  %v2010_v23 = vld [vmem:[%s2791_s16 + $0x1] ss:$0 sm:$0xff] }
 0xc10   : > { %1595 = vadd.xlane.f32.xlu0 %v1594_v24 }
 0xc83   : > { %v1596_v30 = vpop.xlane.xlu0 %1595 }
 0xc84   : > { %v1597_v31 = vmul.f32 0.03125, %v1596_v30  ;;  %v1736_v30 = vld [vmem:[%s2833_s0] sm:$0x1] }
 0xc86   : > { %v1598_v32 = vadd.f32 1e-12, %v1597_v31 }
 0xc88   : > { %2036 = vrsqrt.f32 %v1598_v32  ;;  %vm1605_vm1 = vweird.f32 %v1598_v32 }
 0xc8e   : > { %v2037_v33 = vpop.eup %2036 }
 0xc8f   : > { %v1600_v34 = vmul.f32 %v2037_v33, %v1598_v32  ;;  %vm1606_vm0 = vweird.f32 %v2037_v33 }
 0xc90   : > { %vm1607_vm2 = vmor %vm1605_vm1, %vm1606_vm0 }
 0xc91   : > { %v1601_v35 = vmul.f32 %v2037_v33, %v1600_v34 }
 0xc93   : > { %v1602_v36 = vmul.f32 0.5, %v1601_v35 }
 0xc95   : > { %v1603_v37 = vsub.f32 1.5, %v1602_v36 }
 0xc97   : > { %v1604_v38 = vmul.f32 %v2037_v33, %v1603_v37 }
 0xc99   : > { %v1608_v40 = vsel %vm1607_vm2, %v2037_v33, %v1604_v38 }
 0xc9a   : > { %v1609_v41 = vmul.f32 %v1608_v40, %v1592_v21 }
 0xc9c   : > { %v1613_v43 = vmul.f32 %v2006_v39, %v1609_v41 }
 0xc9e   : > { %v1617_v44 = vadd.f32 %v2007_v42, %v1613_v43 }
 0xca0   : > { %1924 = vmatmul.msk.f32.vlgmr.msrb.gmra.mxu3 %vm694_vm3, %v1617_v44 }
 0xd23   : > { %v1648_v54 = vpop.f32.mrf.mxu3 }
 0xd24   : > { %v1649_v55 = vadd.f32 %v2008_v53, %v1648_v54 }
 0xd26   : > { %v1652_v56 = vmul.f32 0.044715, %v1649_v55  ;;  %v1651_v22 = vmul.f32 0.5, %v1649_v55 }
 0xd28   : > { %v1653_v57 = vmul.f32 %v1652_v56, %v1649_v55 }
 0xd2a   : > { %v1654_v58 = vmul.f32 %v1653_v57, %v1649_v55 }
 0xd2c   : > { %v1655_v59 = vadd.f32 %v1654_v58, %v1649_v55 }
 0xd2e   : > { %v1656_v60 = vmul.f32 0.7978846, %v1655_v59 }
 0xd30   : > { %2038 = vtanh.f32 %v1656_v60 }
 0xd36   : > { %v2039_v61 = vpop.eup %2038 }
 0xd37   : > { %v1658_v62 = vadd.f32 1.0, %v2039_v61 }
 0xd39   : > { %v1659_v63 = vmul.f32 %v1658_v62, %v1651_v22 }
 0xd3b   : > { %1934 = vmatmul.msk.f32.vlgmr.msra.gmra.mxu0 %vm1171_vm12, %v1659_v63 }
 0xdb8   : > { %v1694_v27 = vpop.f32.mrf.mxu0 }
 0xdb9   : > { %v1695_v1 = vadd.f32 %v2009_v0, %v1694_v27 }
 0xdbb   : > { %v1697_v2 = vadd.f32 %v1695_v1, %v1617_v44 }
 0xdbd   : > { %v1702_v4 = vsel %vm694_vm3, %v1697_v2, 0.0 }
 0xdbe   : > { %1703 = vadd.xlane.f32.xlu1 %v1702_v4 }
 0xe31   : > { %v1704_v3 = vpop.xlane.xlu1 %1703 }
 0xe32   : > { %v1705_v5 = vmul.f32 0.03125, %v1704_v3 }
 0xe34   : > { %v1706_v6 = vsub.f32 %v1697_v2, %v1705_v5 }
 0xe36   : > { %v1707_v7 = vmul.f32 %v1706_v6, %v1706_v6 }
 0xe38   : > { %v1708_v8 = vsel %vm694_vm3, %v1707_v7, 0.0 }
 0xe39   : > { %1709 = vadd.xlane.f32.xlu2 %v1708_v8 }
 0xeac   : > { %v1710_v13 = vpop.xlane.xlu2 %1709 }
 0xead   : > { %v1711_v14 = vmul.f32 0.03125, %v1710_v13 }
 0xeaf   : > { %v1712_v15 = vadd.f32 1e-12, %v1711_v14 }
 0xeb1   : > { %2040 = vrsqrt.f32 %v1712_v15  ;;  %vm1719_vm5 = vweird.f32 %v1712_v15 }
 0xeb7   : > { %v2041_v16 = vpop.eup %2040 }
 0xeb8   : > { %v1714_v17 = vmul.f32 %v2041_v16, %v1712_v15  ;;  %vm1720_vm4 = vweird.f32 %v2041_v16 }
 0xeb9   : > { %vm1721_vm6 = vmor %vm1719_vm5, %vm1720_vm4 }
 0xeba   : > { %v1715_v18 = vmul.f32 %v2041_v16, %v1714_v17 }
 0xebc   : > { %v1716_v19 = vmul.f32 0.5, %v1715_v18 }
 0xebe   : > { %v1717_v20 = vsub.f32 1.5, %v1716_v19 }
 0xec0   : > { %v1718_v21 = vmul.f32 %v2041_v16, %v1717_v20 }
 0xec2   : > { %v1722_v24 = vsel %vm1721_vm6, %v2041_v16, %v1718_v21 }
 0xec3   : > { %v1723_v25 = vmul.f32 %v1722_v24, %v1706_v6 }
 0xec5   : > { %v1727_v28 = vmul.f32 %v2010_v23, %v1723_v25 }
 0xec7   : > { %v1731_v29 = vadd.f32 %v2011_v26, %v1727_v28 }
 0xec9   : > { %1937 = vmatmul.msk.f32.vlgmr.msrb.gmra.mxu1 %vm694_vm3, %v1731_v29 }
 0xf46   : > { %v1757_v31 = vpop.f32.mrf.mxu1 }
 0xf47   : > { %v1758_v32 = vadd.f32 %v1757_v31, %v1736_v30 }
 0xf49   : > { %2042 = vtanh.f32 %v1758_v32 }
 0xf4f   : > { %v2043_v33 = vpop.eup %2042 }
 0xf50   : > { %1762 = vst.msk [vmem:[%s632_s30] sm:$0x1] %vm1761_vm7, %v2043_v33 }
 0xf51   : > { %2071 = shalt.err (!%p2068_p3)
}
 0xf52   : > { %1940 = dma.vmem_to_hbm [thread:$0]  (%p2253_p5), %s1775_s2, 16, %s1777_s20, %s1764_s28  }
 0xf53 PF: > { %s2836_s25 = sld [smem:[#allocation8_spill]] }
 0xf54   : > { %s2837_s23 = sld [smem:[#allocation5_spill]] }
 0xf59   : > { %p1946_p4 = scmp.ge.s32.totalorder %s2836_s25, 2 }
 0xf5a   : > { %s1788_s30 = sand.u32 1, %s2837_s23  }
 0xf5b   : > { %p1943_p7 = pnand %p1946_p4, %p2257_p6  ;;  %s1789_s4 = scalar_lea.sflag [#allocation3], %s1788_s30 }
 0xf5d   : > { %p1944_p8 = pneg %p1943_p7 }
 0xf5f   : > { %2089 = dma.done.wait (%p1944_p8), %s1789_s4, 16  }
 0xf60   : > { %2091 = vsyncadd (%p1944_p8), %s1789_s4, 4294967280  ;;  %s2839_s24 = sld [smem:[#allocation10_spill]] }
 0xf61   : > { %s2840_s1 = sld [smem:[#allocation6_spill]] }
 0xf62   : > { %s2841_s22 = sld [smem:[#allocation7_spill]] }
 0xf63   : > { %s2842_s23 = sld [smem:[#allocation11_spill]] }
 0xf66   : > { %p30_p9 = scmp.ge.s32.totalorder %s2839_s24, 4  }
 0xf68   :  { %32 = sbr.rel (!%p30_p9) target bundleno = 11 (0xb), region = 150 }
 0xf6d   :  { %1794 = vsyncpa [#allocation3], 1 }
 0xf6e   :  { %1796 = vsyncpa [#allocation3 + $0x1], 1 }

</bundles_post_ra>
